<compile_context>
chip_gen: v7x
topology: tpu7x:2x2x1
jax: 0.10.0
libtpu: 0.0.40
codegen_flags: <defaults>
</compile_context>

<pallas_src>
import jax
import jax.numpy as jnp
from jax.experimental import pallas as pl
from jax.experimental.pallas import tpu as pltpu

MAX_LEN = 362  # hardcoded in the PyTorch forward: padding_mask(..., max_len=362)


def _length_mask_kernel(x_ref, len_ref, mask_ref):
    """Compute lengths + padding mask for one batch tile.

    x_ref    : [bt, T, F] float32 VMEM (native layout: time on sublanes,
               features on lanes — lane-padded in VMEM, but HBM traffic is
               only the real F=8 columns).
    len_ref  : [bt, 1]   int32 VMEM
    mask_ref : [bt, ML]  int8  VMEM  (ML == max_len, time lane-dense)
    """
    x = x_ref[...]                                   # [bt, T, F]
    bt, T, _ = x.shape

    # is_zero[b, t] = all features at timepoint t are exactly zero
    # (feature axis is the lane axis -> single XLU lane reduce per row).
    is_zero = jnp.all(x == 0.0, axis=2)              # [bt, T] bool

    # first all-zero index (or T if none) — mirrors the python break loop.
    t_idx = jax.lax.broadcasted_iota(jnp.int32, (bt, T), 1)
    lengths = jnp.min(jnp.where(is_zero, t_idx, jnp.int32(T)),
                      axis=1, keepdims=True)         # [bt, 1] int32
    len_ref[...] = lengths

    # padding mask: mask[b, j] = j < length[b]; written at exactly max_len
    # width (only the final 128-lane group needs a masked store — negligible).
    ML = mask_ref.shape[1]
    j_idx = jax.lax.broadcasted_iota(jnp.int32, (bt, ML), 1)
    mask_ref[...] = (j_idx < lengths).astype(jnp.int8)


def _pick_batch_tile(B):
    """Multiple-of-8 batch tile (<=32 rows) with >=2 grid steps when possible.

    - <=32 rows keeps the lane-padded [bt, T, 128] f32 input block within the
      default/raised scoped-VMEM budget on all of v5e/v6e/v7x.
    - >=2 grid steps lets the 'parallel' batch axis shard across v7x's 2 TCs.
    - small / ragged batches fall back to a single full-batch block (legal).
    """
    if B < 16 or B % 8 != 0:
        return B
    half = (B // 2) // 8 * 8
    return max(8, min(32, half))


def model_wrapper_forward(x, max_len=MAX_LEN):
    """Replicates ModelWrapper.forward's length + padding-mask computation.

    x: [B, T, F] float32 (zero-padded along the time axis)
    returns: (lengths [B] int32, padding_mask [B, max_len] bool)
    """
    B, T, F = x.shape
    bt = _pick_batch_tile(B)
    grid = (pl.cdiv(B, bt),)

    lengths_2d, mask_i8 = pl.pallas_call(
        _length_mask_kernel,
        out_shape=(jax.ShapeDtypeStruct((B, 1), jnp.int32),
                   jax.ShapeDtypeStruct((B, max_len), jnp.int8)),
        grid=grid,
        in_specs=[pl.BlockSpec((bt, T, F), lambda b: (b, 0, 0))],
        out_specs=(pl.BlockSpec((bt, 1), lambda b: (b, 0)),
                   pl.BlockSpec((bt, max_len), lambda b: (b, 0))),
        compiler_params=pltpu.CompilerParams(
            dimension_semantics=("parallel",),
            vmem_limit_bytes=32 * 1024 * 1024),
    )(x)

    lengths = lengths_2d[:, 0]                       # [B] int32 (4B/row, trivial)
    # Downstream consumers that accept int8 masks can use mask_i8 directly and
    # skip this tiny cast.
    mask = mask_i8.astype(jnp.bool_)                 # [B, max_len] bool
    return lengths, mask


def _reference(x, max_len=MAX_LEN):
    """Pure-JAX reference for validation."""
    B, T, F = x.shape
    is_zero = jnp.all(x == 0.0, axis=-1)                       # [B, T]
    t_idx = jnp.arange(T, dtype=jnp.int32)[None, :]
    lengths = jnp.min(jnp.where(is_zero, t_idx, T), axis=1)    # [B]
    mask = jnp.arange(max_len, dtype=jnp.int32)[None, :] < lengths[:, None]
    return lengths.astype(jnp.int32), mask


def _make_input(key, B, T, F, true_lengths):
    data = jax.random.normal(key, (B, T, F), dtype=jnp.float32)
    # ensure no accidental exact zeros inside the valid region
    data = jnp.where(data == 0.0, jnp.float32(1.0), data)
    t_grid = jnp.arange(T, dtype=jnp.int32)[None, :, None]     # [1, T, 1]
    valid = (t_grid < true_lengths[:, None, None]).astype(jnp.float32)
    return data * valid                                        # zero-pad tails


if __name__ == "__main__":
    key = jax.random.PRNGKey(0)

    # Small deterministic example consistent with the module: batch of 2
    # sequences, T = max_len = 362 timepoints, 8 features, zero-padded tails.
    B, T, F = 2, MAX_LEN, 8
    true_lengths = jnp.array([100, 250], dtype=jnp.int32)
    x = _make_input(key, B, T, F, true_lengths)

    lengths, mask = model_wrapper_forward(x)
    jax.block_until_ready((lengths, mask))

    ref_lengths, ref_mask = _reference(x)
    assert jnp.array_equal(lengths, ref_lengths), (lengths, ref_lengths)
    assert jnp.array_equal(mask, ref_mask)
    assert jnp.array_equal(lengths, true_lengths)

    # Tiled (batch-grid) path: B=64 -> bt=32, 2 parallel grid steps.
    B2, T2 = 64, 96
    key2 = jax.random.PRNGKey(1)
    true_lengths2 = (jax.random.randint(key2, (B2,), 1, T2 + 1)
                     .astype(jnp.int32))
    x2 = _make_input(jax.random.PRNGKey(2), B2, T2, F, true_lengths2)

    lengths2, mask2 = model_wrapper_forward(x2)
    jax.block_until_ready((lengths2, mask2))

    ref_lengths2, ref_mask2 = _reference(x2)
    assert jnp.array_equal(lengths2, ref_lengths2)
    assert jnp.array_equal(mask2, ref_mask2)
    assert jnp.array_equal(lengths2, true_lengths2)

    # T > max_len with one sequence that never hits an all-zero frame:
    # length must NOT be clamped to max_len (fixed by emitting it from the
    # kernel instead of row-summing the 362-wide mask).
    B3, T3 = 2, 400
    true_lengths3 = jnp.array([400, 150], dtype=jnp.int32)
    x3 = _make_input(jax.random.PRNGKey(3), B3, T3, F, true_lengths3)

    lengths3, mask3 = model_wrapper_forward(x3)
    jax.block_until_ready((lengths3, mask3))

    ref_lengths3, ref_mask3 = _reference(x3)
    assert jnp.array_equal(lengths3, ref_lengths3)
    assert jnp.array_equal(mask3, ref_mask3)
    assert jnp.array_equal(lengths3, true_lengths3)

    print("KERNEL_OK")
</pallas_src>

<mosaic_0001>
module attributes {stable_mosaic.version = 11 : i64} {
  func.func @_length_mask_kernel(%arg0: i32, %arg1: memref<2x362x8xf32, #tpu.memory_space<vmem>>, %arg2: memref<2x1xi32, #tpu.memory_space<vmem>>, %arg3: memref<2x362xi8, #tpu.memory_space<vmem>>) attributes {dimension_semantics = [#tpu.dimension_semantics<parallel>], iteration_bounds = array<i64: 1>, scalar_prefetch = 0 : i64, scratch_operands = 0 : i64, tpu.core_type = #tpu.core_type<tc>, window_params = [{transform_indices = @transform_0, window_bounds = array<i64: 2, 362, 8>}, {transform_indices = @transform_1, window_bounds = array<i64: 2, 1>}, {transform_indices = @transform_2, window_bounds = array<i64: 2, 362>}]} {
    %c0 = arith.constant 0 : index
    %c0_0 = arith.constant 0 : index
    %c0_1 = arith.constant 0 : index
    %0 = vector.load %arg1[%c0, %c0_0, %c0_1] : memref<2x362x8xf32, #tpu.memory_space<vmem>>, vector<2x362x8xf32>
    %cst = arith.constant 0.000000e+00 : f32
    %1 = vector.broadcast %cst : f32 to vector<2x362x8xf32>
    %2 = arith.cmpf oeq, %0, %1 : vector<2x362x8xf32>
    %cst_2 = arith.constant 1.000000e+00 : f32
    %cst_3 = arith.constant 0.000000e+00 : f32
    %3 = vector.broadcast %cst_2 : f32 to vector<2x362x8xf32>
    %4 = vector.broadcast %cst_3 : f32 to vector<2x362x8xf32>
    %5 = arith.select %2, %3, %4 : vector<2x362x8xi1>, vector<2x362x8xf32>
    %cst_4 = arith.constant dense<0x7F800000> : vector<2x362xf32>
    %6 = vector.multi_reduction <minimumf>, %5, %cst_4 [2] : vector<2x362x8xf32> to vector<2x362xf32>
    %cst_5 = arith.constant 0.000000e+00 : f32
    %7 = vector.broadcast %cst_5 : f32 to vector<2x362xf32>
    %8 = arith.cmpf ogt, %6, %7 : vector<2x362xf32>
    %9 = tpu.iota {dimensions = array<i32: 1>} : vector<2x362xi32>
    %c362_i32 = arith.constant 362 : i32
    %10 = vector.broadcast %c362_i32 : i32 to vector<2x362xi32>
    %11 = arith.select %8, %9, %10 : vector<2x362xi1>, vector<2x362xi32>
    %cst_6 = arith.constant dense<2147483647> : vector<2xi32>
    %12 = vector.multi_reduction <minsi>, %11, %cst_6 [1] : vector<2x362xi32> to vector<2xi32>
    %13 = vector.shape_cast %12 : vector<2xi32> to vector<2x1xi32>
    %c0_7 = arith.constant 0 : index
    %c0_8 = arith.constant 0 : index
    %14 = vector.load %arg2[%c0_7, %c0_8] : memref<2x1xi32, #tpu.memory_space<vmem>>, vector<2x1xi32>
    tpu.vector_store %arg2[%c0_7, %c0_8], %13 {strides = array<i32>} : memref<2x1xi32, #tpu.memory_space<vmem>>, vector<2x1xi32>,
    %15 = tpu.iota {dimensions = array<i32: 1>} : vector<2x362xi32>
    %16 = vector.broadcast %13 : vector<2x1xi32> to vector<2x362xi32>
    %17 = arith.cmpi slt, %15, %16 : vector<2x362xi32>
    %18 = arith.extui %17 : vector<2x362xi1> to vector<2x362xi8>
    %c0_9 = arith.constant 0 : index
    %c0_10 = arith.constant 0 : index
    %19 = vector.load %arg3[%c0_9, %c0_10] : memref<2x362xi8, #tpu.memory_space<vmem>>, vector<2x362xi8>
    tpu.vector_store %arg3[%c0_9, %c0_10], %18 {strides = array<i32>} : memref<2x362xi8, #tpu.memory_space<vmem>>, vector<2x362xi8>,
    return
  }
  func.func @transform_0(%arg0: i32) -> (i32, i32, i32) {
    %c0_i32 = arith.constant 0 : i32
    %c0_i32_0 = arith.constant 0 : i32
    %c0_i32_1 = arith.constant 0 : i32
    return %arg0, %c0_i32, %c0_i32_0 : i32, i32, i32
  }
  func.func @transform_1(%arg0: i32) -> (i32, i32) {
    %c0_i32 = arith.constant 0 : i32
    %c0_i32_0 = arith.constant 0 : i32
    return %arg0, %c0_i32 : i32, i32
  }
  func.func @transform_2(%arg0: i32) -> (i32, i32) {
    %c0_i32 = arith.constant 0 : i32
    %c0_i32_0 = arith.constant 0 : i32
    return %arg0, %c0_i32 : i32, i32
  }
}

</mosaic_0001>

<bundles_post_ra>
// kernel: tpu_custom_call.1
= control target key start
LH: loop header
LB: loop body
LE: loop exit
PB: predicated region body
PF: predicated region fallthrough
CT: control target
= control target key end

     0   :  { %vm289_vm0 = vcmask 64512   ;;  %v1822_v6 = vmov 0.0   ;;  %s3136_s0 = inlined_call_operand.vmem [shape: f32[2,362,8], index: 0, kind: input, shape index: {}]   ;;  %s3137_s1 = inlined_call_operand.vmem [shape: s32[2,1], index: 1, kind: output, shape index: {0}]   ;;  %s3138_s2 = inlined_call_operand.hbm [shape: s8[2,362], index: 2, kind: output, shape index: {1}]  }
   0x1   :  { %v15_v0 = vld [vmem:[%s3136_s0 + $0x10] sm:$0xff]  ;;  %v13_v1 = vld [vmem:[%s3136_s0] sm:$0xff]  ;;  %v16_v2 = vld [vmem:[%s3136_s0 + $0x18] sm:$0xff] }
   0x2   :  { %vm107_vm1 = vcmp.eq.f32.partialorder %v15_v0, 0.0  ;;  %vm105_vm2 = vcmp.eq.f32.partialorder %v13_v1, 0.0  ;;  %vm108_vm3 = vcmp.eq.f32.partialorder %v16_v2, 0.0  ;;  %v14_v3 = vld [vmem:[%s3136_s0 + $0x8] sm:$0xff]  ;;  %v17_v5 = vld [vmem:[%s3136_s0 + $0x20] sm:$0xff]  ;;  %v20_v13 = vld [vmem:[%s3136_s0 + $0x38] sm:$0xff] }
   0x3   :  { %v18_v4 = vld [vmem:[%s3136_s0 + $0x28] sm:$0xff]  ;;  %v199_v7 = vsel %vm107_vm1, 1.0, %v1822_v6  ;;  %v197_v8 = vsel %vm105_vm2, 1.0, %v1822_v6  ;;  %v200_v9 = vsel %vm108_vm3, 1.0, %v1822_v6  ;;  %vm106_vm4 = vcmp.eq.f32.partialorder %v14_v3, 0.0  ;;  %v19_v14 = vld [vmem:[%s3136_s0 + $0x30] sm:$0xff] }
   0x4   :  { %v296_v10 = vsel %vm289_vm0, %v199_v7, inf  ;;  %v290_v11 = vsel %vm289_vm0, %v197_v8, inf  ;;  %v198_v12 = vsel %vm106_vm4, 1.0, %v1822_v6  ;;  %vm110_vm5 = vcmp.eq.f32.partialorder %v18_v4, 0.0  ;;  %v22_v19 = vld [vmem:[%s3136_s0 + $0x48] sm:$0xff]  ;;  %v21_v20 = vld [vmem:[%s3136_s0 + $0x40] sm:$0xff] }
   0x5   :  { %297 = vmin.xlane.f32.xlu1 %v296_v10  ;;  %291 = vmin.xlane.f32.xlu0 %v290_v11  ;;  %vm109_vm6 = vcmp.eq.f32.partialorder %v17_v5, 0.0  ;;  %v299_v15 = vsel %vm289_vm0, %v200_v9, inf  ;;  %v293_v16 = vsel %vm289_vm0, %v198_v12, inf  ;;  %v202_v17 = vsel %vm110_vm5, 1.0, %v1822_v6  ;;  %v24_v25 = vld [vmem:[%s3136_s0 + $0x58] sm:$0xff]  ;;  %v23_v26 = vld [vmem:[%s3136_s0 + $0x50] sm:$0xff] }
   0x6   :  { %v201_v18 = vsel %vm109_vm6, 1.0, %v1822_v6  ;;  %vm112_vm7 = vcmp.eq.f32.partialorder %v20_v13, 0.0  ;;  %vm111_vm8 = vcmp.eq.f32.partialorder %v19_v14, 0.0  ;;  %v305_v21 = vsel %vm289_vm0, %v202_v17, inf  ;;  %v26_v31 = vld [vmem:[%s3136_s0 + $0x68] sm:$0xff]  ;;  %v25_v32 = vld [vmem:[%s3136_s0 + $0x60] sm:$0xff] }
   0x7   :  { %v302_v22 = vsel %vm289_vm0, %v201_v18, inf  ;;  %v204_v23 = vsel %vm112_vm7, 1.0, %v1822_v6  ;;  %v203_v24 = vsel %vm111_vm8, 1.0, %v1822_v6  ;;  %vm114_vm9 = vcmp.eq.f32.partialorder %v22_v19, 0.0  ;;  %v28_v37 = vld [vmem:[%s3136_s0 + $0x78] sm:$0xff]  ;;  %v27_v38 = vld [vmem:[%s3136_s0 + $0x70] sm:$0xff] }
   0x8   :  { %vm113_vm10 = vcmp.eq.f32.partialorder %v21_v20, 0.0  ;;  %v311_v27 = vsel %vm289_vm0, %v204_v23, inf  ;;  %v308_v28 = vsel %vm289_vm0, %v203_v24, inf  ;;  %v206_v29 = vsel %vm114_vm9, 1.0, %v1822_v6  ;;  %v30_v43 = vld [vmem:[%s3136_s0 + $0x88] sm:$0xff]  ;;  %v29_v44 = vld [vmem:[%s3136_s0 + $0x80] sm:$0xff] }
   0x9   :  { %300 = vmin.xlane.f32.xlu1 %v299_v15  ;;  %294 = vmin.xlane.f32.xlu0 %v293_v16  ;;  %v205_v30 = vsel %vm113_vm10, 1.0, %v1822_v6  ;;  %vm116_vm11 = vcmp.eq.f32.partialorder %v24_v25, 0.0  ;;  %vm115_vm12 = vcmp.eq.f32.partialorder %v23_v26, 0.0  ;;  %v317_v33 = vsel %vm289_vm0, %v206_v29, inf  ;;  %v32_v49 = vld [vmem:[%s3136_s0 + $0x98] sm:$0xff]  ;;  %v31_v50 = vld [vmem:[%s3136_s0 + $0x90] sm:$0xff] }
   0xa   :  { %v314_v34 = vsel %vm289_vm0, %v205_v30, inf  ;;  %v208_v35 = vsel %vm116_vm11, 1.0, %v1822_v6  ;;  %v207_v36 = vsel %vm115_vm12, 1.0, %v1822_v6  ;;  %vm118_vm13 = vcmp.eq.f32.partialorder %v26_v31, 0.0  ;;  %v34_v55 = vld [vmem:[%s3136_s0 + $0xa8] sm:$0xff]  ;;  %v33_v56 = vld [vmem:[%s3136_s0 + $0xa0] sm:$0xff] }
   0xb   :  { %vm117_vm14 = vcmp.eq.f32.partialorder %v25_v32, 0.0  ;;  %v323_v39 = vsel %vm289_vm0, %v208_v35, inf  ;;  %v320_v40 = vsel %vm289_vm0, %v207_v36, inf  ;;  %v210_v41 = vsel %vm118_vm13, 1.0, %v1822_v6  ;;  %v36_v61 = vld [vmem:[%s3136_s0 + $0xb8] sm:$0xff]  ;;  %v35_v62 = vld [vmem:[%s3136_s0 + $0xb0] sm:$0xff] }
   0xc   :  { %v209_v42 = vsel %vm117_vm14, 1.0, %v1822_v6  ;;  %vm120_vm15 = vcmp.eq.f32.partialorder %v28_v37, 0.0  ;;  %vm119_vm1 = vcmp.eq.f32.partialorder %v27_v38, 0.0  ;;  %v329_v45 = vsel %vm289_vm0, %v210_v41, inf  ;;  %v38_v3 = vld [vmem:[%s3136_s0 + $0xc8] sm:$0xff]  ;;  %v37_v4 = vld [vmem:[%s3136_s0 + $0xc0] sm:$0xff] }
   0xd   :  { %306 = vmin.xlane.f32.xlu1 %v305_v21  ;;  %303 = vmin.xlane.f32.xlu0 %v302_v22  ;;  %v326_v46 = vsel %vm289_vm0, %v209_v42, inf  ;;  %v212_v47 = vsel %vm120_vm15, 1.0, %v1822_v6  ;;  %v211_v48 = vsel %vm119_vm1, 1.0, %v1822_v6  ;;  %vm122_vm2 = vcmp.eq.f32.partialorder %v30_v43, 0.0 }
   0xe   :  { %vm121_vm3 = vcmp.eq.f32.partialorder %v29_v44, 0.0  ;;  %v335_v51 = vsel %vm289_vm0, %v212_v47, inf  ;;  %v332_v52 = vsel %vm289_vm0, %v211_v48, inf  ;;  %v214_v53 = vsel %vm122_vm2, 1.0, %v1822_v6 }
   0xf   :  { %v213_v54 = vsel %vm121_vm3, 1.0, %v1822_v6  ;;  %vm124_vm4 = vcmp.eq.f32.partialorder %v32_v49, 0.0  ;;  %vm123_vm5 = vcmp.eq.f32.partialorder %v31_v50, 0.0  ;;  %v341_v57 = vsel %vm289_vm0, %v214_v53, inf }
  0x10   :  { %v338_v58 = vsel %vm289_vm0, %v213_v54, inf  ;;  %v216_v59 = vsel %vm124_vm4, 1.0, %v1822_v6  ;;  %v215_v60 = vsel %vm123_vm5, 1.0, %v1822_v6  ;;  %vm126_vm6 = vcmp.eq.f32.partialorder %v34_v55, 0.0 }
  0x11   :  { %312 = vmin.xlane.f32.xlu1 %v311_v27  ;;  %309 = vmin.xlane.f32.xlu0 %v308_v28  ;;  %vm125_vm7 = vcmp.eq.f32.partialorder %v33_v56, 0.0  ;;  %v347_v63 = vsel %vm289_vm0, %v216_v59, inf  ;;  %v344_v0 = vsel %vm289_vm0, %v215_v60, inf  ;;  %v218_v1 = vsel %vm126_vm6, 1.0, %v1822_v6 }
  0x12   :  { %v217_v2 = vsel %vm125_vm7, 1.0, %v1822_v6  ;;  %vm128_vm8 = vcmp.eq.f32.partialorder %v36_v61, 0.0  ;;  %vm127_vm9 = vcmp.eq.f32.partialorder %v35_v62, 0.0  ;;  %v353_v5 = vsel %vm289_vm0, %v218_v1, inf }
  0x13   :  { %v350_v7 = vsel %vm289_vm0, %v217_v2, inf  ;;  %v220_v8 = vsel %vm128_vm8, 1.0, %v1822_v6  ;;  %v219_v9 = vsel %vm127_vm9, 1.0, %v1822_v6  ;;  %vm130_vm10 = vcmp.eq.f32.partialorder %v38_v3, 0.0 }
  0x14   :  { %vm129_vm11 = vcmp.eq.f32.partialorder %v37_v4, 0.0 }
  0x15   :  { %318 = vmin.xlane.f32.xlu1 %v317_v33  ;;  %315 = vmin.xlane.f32.xlu0 %v314_v34 }
  0x19   :  { %324 = vmin.xlane.f32.xlu1 %v323_v39  ;;  %321 = vmin.xlane.f32.xlu0 %v320_v40 }
  0x1d   :  { %330 = vmin.xlane.f32.xlu1 %v329_v45  ;;  %327 = vmin.xlane.f32.xlu0 %v326_v46 }
  0x21   :  { %336 = vmin.xlane.f32.xlu1 %v335_v51  ;;  %333 = vmin.xlane.f32.xlu0 %v332_v52 }
  0x25   :  { %342 = vmin.xlane.f32.xlu1 %v341_v57  ;;  %339 = vmin.xlane.f32.xlu0 %v338_v58 }
  0x29   :  { %348 = vmin.xlane.f32.xlu1 %v347_v63  ;;  %345 = vmin.xlane.f32.xlu0 %v344_v0 }
  0x2a   :  { %8 = vsyncpa [#allocation3], 0  ;;  %v40_v10 = vld [vmem:[%s3136_s0 + $0xd8] sm:$0xff]  ;;  %v39_v11 = vld [vmem:[%s3136_s0 + $0xd0] sm:$0xff]  ;;  %v359_v12 = vsel %vm289_vm0, %v220_v8, inf  ;;  %v356_v13 = vsel %vm289_vm0, %v219_v9, inf }
  0x2b   :  { %v222_v14 = vsel %vm130_vm10, 1.0, %v1822_v6  ;;  %v221_v15 = vsel %vm129_vm11, 1.0, %v1822_v6  ;;  %vm132_vm12 = vcmp.eq.f32.partialorder %v40_v10, 0.0  ;;  %vm131_vm13 = vcmp.eq.f32.partialorder %v39_v11, 0.0  ;;  %v42_v16 = vld [vmem:[%s3136_s0 + $0xe8] sm:$0xff]  ;;  %v41_v17 = vld [vmem:[%s3136_s0 + $0xe0] sm:$0xff] }
  0x2c   :  { %v365_v18 = vsel %vm289_vm0, %v222_v14, inf  ;;  %v362_v19 = vsel %vm289_vm0, %v221_v15, inf  ;;  %v224_v20 = vsel %vm132_vm12, 1.0, %v1822_v6  ;;  %v223_v21 = vsel %vm131_vm13, 1.0, %v1822_v6  ;;  %v44_v22 = vld [vmem:[%s3136_s0 + $0xf8] sm:$0xff]  ;;  %v43_v23 = vld [vmem:[%s3136_s0 + $0xf0] sm:$0xff] }
  0x2d   :  { %354 = vmin.xlane.f32.xlu1 %v353_v5  ;;  %351 = vmin.xlane.f32.xlu0 %v350_v7  ;;  %vm134_vm14 = vcmp.eq.f32.partialorder %v42_v16, 0.0  ;;  %vm133_vm15 = vcmp.eq.f32.partialorder %v41_v17, 0.0  ;;  %v371_v24 = vsel %vm289_vm0, %v224_v20, inf  ;;  %v368_v25 = vsel %vm289_vm0, %v223_v21, inf  ;;  %v46_v28 = vld [vmem:[%s3136_s0 + $0x108] sm:$0xff]  ;;  %v45_v29 = vld [vmem:[%s3136_s0 + $0x100] sm:$0xff] }
  0x2e   :  { %v226_v26 = vsel %vm134_vm14, 1.0, %v1822_v6  ;;  %v225_v27 = vsel %vm133_vm15, 1.0, %v1822_v6  ;;  %vm136_vm1 = vcmp.eq.f32.partialorder %v44_v22, 0.0  ;;  %vm135_vm2 = vcmp.eq.f32.partialorder %v43_v23, 0.0  ;;  %v48_v34 = vld [vmem:[%s3136_s0 + $0x118] sm:$0xff]  ;;  %v47_v35 = vld [vmem:[%s3136_s0 + $0x110] sm:$0xff] }
  0x2f   :  { %v377_v30 = vsel %vm289_vm0, %v226_v26, inf  ;;  %v374_v31 = vsel %vm289_vm0, %v225_v27, inf  ;;  %v228_v32 = vsel %vm136_vm1, 1.0, %v1822_v6  ;;  %v227_v33 = vsel %vm135_vm2, 1.0, %v1822_v6  ;;  %v50_v40 = vld [vmem:[%s3136_s0 + $0x128] sm:$0xff]  ;;  %v49_v41 = vld [vmem:[%s3136_s0 + $0x120] sm:$0xff] }
  0x30   :  { %vm138_vm3 = vcmp.eq.f32.partialorder %v46_v28, 0.0  ;;  %vm137_vm4 = vcmp.eq.f32.partialorder %v45_v29, 0.0  ;;  %v383_v36 = vsel %vm289_vm0, %v228_v32, inf  ;;  %v380_v37 = vsel %vm289_vm0, %v227_v33, inf  ;;  %v52_v46 = vld [vmem:[%s3136_s0 + $0x138] sm:$0xff]  ;;  %v51_v47 = vld [vmem:[%s3136_s0 + $0x130] sm:$0xff] }
  0x31   :  { %360 = vmin.xlane.f32.xlu1 %v359_v12  ;;  %357 = vmin.xlane.f32.xlu0 %v356_v13  ;;  %v230_v38 = vsel %vm138_vm3, 1.0, %v1822_v6  ;;  %v229_v39 = vsel %vm137_vm4, 1.0, %v1822_v6  ;;  %vm140_vm5 = vcmp.eq.f32.partialorder %v48_v34, 0.0  ;;  %vm139_vm6 = vcmp.eq.f32.partialorder %v47_v35, 0.0  ;;  %v54_v52 = vld [vmem:[%s3136_s0 + $0x148] sm:$0xff]  ;;  %v53_v53 = vld [vmem:[%s3136_s0 + $0x140] sm:$0xff] }
  0x32   :  { %v389_v42 = vsel %vm289_vm0, %v230_v38, inf  ;;  %v386_v43 = vsel %vm289_vm0, %v229_v39, inf  ;;  %v232_v44 = vsel %vm140_vm5, 1.0, %v1822_v6  ;;  %v231_v45 = vsel %vm139_vm6, 1.0, %v1822_v6  ;;  %v56_v58 = vld [vmem:[%s3136_s0 + $0x158] sm:$0xff]  ;;  %v55_v59 = vld [vmem:[%s3136_s0 + $0x150] sm:$0xff] }
  0x33   :  { %vm142_vm7 = vcmp.eq.f32.partialorder %v50_v40, 0.0  ;;  %vm141_vm8 = vcmp.eq.f32.partialorder %v49_v41, 0.0  ;;  %v395_v48 = vsel %vm289_vm0, %v232_v44, inf  ;;  %v392_v49 = vsel %vm289_vm0, %v231_v45, inf  ;;  %v58_v0 = vld [vmem:[%s3136_s0 + $0x168] sm:$0x3] }
  0x34   :  { %v234_v50 = vsel %vm142_vm7, 1.0, %v1822_v6  ;;  %v233_v51 = vsel %vm141_vm8, 1.0, %v1822_v6  ;;  %vm144_vm9 = vcmp.eq.f32.partialorder %v52_v46, 0.0  ;;  %vm143_vm10 = vcmp.eq.f32.partialorder %v51_v47, 0.0  ;;  %v57_v1 = vld [vmem:[%s3136_s0 + $0x160] sm:$0xff]  ;;  %v60_v7 = vld [vmem:[%s3136_s0 + $0x178] sm:$0xff] }
  0x35   :  { %366 = vmin.xlane.f32.xlu1 %v365_v18  ;;  %363 = vmin.xlane.f32.xlu0 %v362_v19  ;;  %v401_v54 = vsel %vm289_vm0, %v234_v50, inf  ;;  %v398_v55 = vsel %vm289_vm0, %v233_v51, inf  ;;  %v236_v56 = vsel %vm144_vm9, 1.0, %v1822_v6  ;;  %v235_v57 = vsel %vm143_vm10, 1.0, %v1822_v6  ;;  %v59_v8 = vld [vmem:[%s3136_s0 + $0x170] sm:$0xff]  ;;  %v62_v13 = vld [vmem:[%s3136_s0 + $0x188] sm:$0xff] }
  0x36   :  { %vm146_vm11 = vcmp.eq.f32.partialorder %v54_v52, 0.0  ;;  %vm145_vm12 = vcmp.eq.f32.partialorder %v53_v53, 0.0  ;;  %v407_v60 = vsel %vm289_vm0, %v236_v56, inf  ;;  %v404_v61 = vsel %vm289_vm0, %v235_v57, inf  ;;  %v61_v14 = vld [vmem:[%s3136_s0 + $0x180] sm:$0xff]  ;;  %v64_v19 = vld [vmem:[%s3136_s0 + $0x198] sm:$0xff] }
  0x37   :  { %v238_v62 = vsel %vm146_vm11, 1.0, %v1822_v6  ;;  %v237_v63 = vsel %vm145_vm12, 1.0, %v1822_v6  ;;  %vm148_vm13 = vcmp.eq.f32.partialorder %v56_v58, 0.0  ;;  %vm147_vm14 = vcmp.eq.f32.partialorder %v55_v59, 0.0  ;;  %v63_v20 = vld [vmem:[%s3136_s0 + $0x190] sm:$0xff]  ;;  %v65_v26 = vld [vmem:[%s3136_s0 + $0x1a0] sm:$0xff] }
  0x38   :  { %v413_v2 = vsel %vm289_vm0, %v238_v62, inf  ;;  %v410_v3 = vsel %vm289_vm0, %v237_v63, inf  ;;  %v240_v4 = vsel %vm148_vm13, 1.0, %v1822_v6  ;;  %v239_v5 = vsel %vm147_vm14, 1.0, %v1822_v6  ;;  %v67_v32 = vld [vmem:[%s3136_s0 + $0x1b0] sm:$0xff]  ;;  %v69_v38 = vld [vmem:[%s3136_s0 + $0x1c0] sm:$0xff] }
  0x39   :  { %372 = vmin.xlane.f32.xlu1 %v371_v24  ;;  %369 = vmin.xlane.f32.xlu0 %v368_v25  ;;  %vm150_vm15 = vcmp.eq.f32.partialorder %v58_v0, 0.0  ;;  %vm149_vm1 = vcmp.eq.f32.partialorder %v57_v1, 0.0  ;;  %v419_v9 = vsel %vm289_vm0, %v240_v4, inf  ;;  %v416_v10 = vsel %vm289_vm0, %v239_v5, inf  ;;  %v66_v25 = vld [vmem:[%s3136_s0 + $0x1a8] sm:$0xff]  ;;  %v71_v44 = vld [vmem:[%s3136_s0 + $0x1d0] sm:$0xff] }
  0x3a   :  { %v242_v11 = vsel %vm150_vm15, 1.0, %v1822_v6  ;;  %vm425_vm2 = vcmask 58368   ;;  %v241_v12 = vsel %vm149_vm1, 1.0, %v1822_v6  ;;  %vm152_vm3 = vcmp.eq.f32.partialorder %v60_v7, 0.0  ;;  %v73_v50 = vld [vmem:[%s3136_s0 + $0x1e0] sm:$0xff]  ;;  %v75_v56 = vld [vmem:[%s3136_s0 + $0x1f0] sm:$0xff] }
  0x3b   :  { %vm151_vm4 = vcmp.eq.f32.partialorder %v59_v8, 0.0  ;;  %v426_v15 = vsel %vm425_vm2, %v242_v11, inf  ;;  %v422_v16 = vsel %vm289_vm0, %v241_v12, inf  ;;  %v244_v17 = vsel %vm152_vm3, 1.0, %v1822_v6  ;;  %v77_v62 = vld [vmem:[%s3136_s0 + $0x200] sm:$0xff]  ;;  %v79_v4 = vld [vmem:[%s3136_s0 + $0x210] sm:$0xff] }
  0x3c   :  { %v243_v18 = vsel %vm151_vm4, 1.0, %v1822_v6  ;;  %vm154_vm5 = vcmp.eq.f32.partialorder %v62_v13, 0.0  ;;  %vm153_vm6 = vcmp.eq.f32.partialorder %v61_v14, 0.0  ;;  %v432_v21 = vsel %vm289_vm0, %v244_v17, inf  ;;  %v81_v11 = vld [vmem:[%s3136_s0 + $0x220] sm:$0xff]  ;;  %v83_v17 = vld [vmem:[%s3136_s0 + $0x230] sm:$0xff] }
  0x3d   :  { %378 = vmin.xlane.f32.xlu1 %v377_v30  ;;  %375 = vmin.xlane.f32.xlu0 %v374_v31  ;;  %v429_v22 = vsel %vm289_vm0, %v243_v18, inf  ;;  %v246_v23 = vsel %vm154_vm5, 1.0, %v1822_v6  ;;  %v245_v24 = vsel %vm153_vm6, 1.0, %v1822_v6  ;;  %vm156_vm7 = vcmp.eq.f32.partialorder %v64_v19, 0.0  ;;  %v68_v31 = vld [vmem:[%s3136_s0 + $0x1b8] sm:$0xff] }
  0x3e   :  { %vm155_vm8 = vcmp.eq.f32.partialorder %v63_v20, 0.0  ;;  %v438_v27 = vsel %vm289_vm0, %v246_v23, inf  ;;  %v435_v28 = vsel %vm289_vm0, %v245_v24, inf  ;;  %v248_v29 = vsel %vm156_vm7, 1.0, %v1822_v6  ;;  %v85_v23 = vld [vmem:[%s3136_s0 + $0x240] sm:$0xff] }
  0x3f   :  { %v247_v30 = vsel %vm155_vm8, 1.0, %v1822_v6  ;;  %vm158_vm9 = vcmp.eq.f32.partialorder %v66_v25, 0.0  ;;  %vm157_vm10 = vcmp.eq.f32.partialorder %v65_v26, 0.0  ;;  %v444_v33 = vsel %vm289_vm0, %v248_v29, inf  ;;  %v87_v29 = vld [vmem:[%s3136_s0 + $0x250] sm:$0xff] }
  0x40   :  { %v441_v34 = vsel %vm289_vm0, %v247_v30, inf  ;;  %v250_v35 = vsel %vm158_vm9, 1.0, %v1822_v6  ;;  %vm160_vm11 = vcmp.eq.f32.partialorder %v68_v31, 0.0  ;;  %vm159_vm12 = vcmp.eq.f32.partialorder %v67_v32, 0.0 }
  0x41   :  { %384 = vmin.xlane.f32.xlu1 %v383_v36  ;;  %381 = vmin.xlane.f32.xlu0 %v380_v37  ;;  %v249_v36 = vsel %vm157_vm10, 1.0, %v1822_v6  ;;  %v70_v37 = vld [vmem:[%s3136_s0 + $0x1c8] sm:$0xff]  ;;  %v450_v39 = vsel %vm289_vm0, %v250_v35, inf  ;;  %v252_v41 = vsel %vm160_vm11, 1.0, %v1822_v6  ;;  %vm161_vm14 = vcmp.eq.f32.partialorder %v69_v38, 0.0  ;;  %v89_v35 = vld [vmem:[%s3136_s0 + $0x260] sm:$0xff] }
  0x42   :  { %v447_v40 = vsel %vm289_vm0, %v249_v36, inf  ;;  %vm162_vm13 = vcmp.eq.f32.partialorder %v70_v37, 0.0  ;;  %v456_v45 = vsel %vm289_vm0, %v252_v41, inf  ;;  %vm163_vm1 = vcmp.eq.f32.partialorder %v71_v44, 0.0 }
  0x43   :  { %v254_v47 = vsel %vm162_vm13, 1.0, %v1822_v6  ;;  %vm165_vm4 = vcmp.eq.f32.partialorder %v73_v50, 0.0  ;;  %vm167_vm6 = vcmp.eq.f32.partialorder %v75_v56, 0.0  ;;  %vm169_vm8 = vcmp.eq.f32.partialorder %v77_v62, 0.0  ;;  %v94_v50 = vld [vmem:[%s3136_s0 + $0x288] sm:$0xff] }
  0x44   :  { %v462_v51 = vsel %vm289_vm0, %v254_v47, inf  ;;  %vm171_vm10 = vcmp.eq.f32.partialorder %v79_v4, 0.0 }
  0x45   :  { %390 = vmin.xlane.f32.xlu1 %v389_v42  ;;  %387 = vmin.xlane.f32.xlu0 %v386_v43  ;;  %v251_v42 = vsel %vm159_vm12, 1.0, %v1822_v6  ;;  %v72_v43 = vld [vmem:[%s3136_s0 + $0x1d8] sm:$0xff]  ;;  %vm173_vm12 = vcmp.eq.f32.partialorder %v81_v11, 0.0 }
  0x46   :  { %v453_v46 = vsel %vm289_vm0, %v251_v42, inf  ;;  %vm164_vm15 = vcmp.eq.f32.partialorder %v72_v43, 0.0  ;;  %v92_v42 = vld [vmem:[%s3136_s0 + $0x278] sm:$0xff]  ;;  %v91_v43 = vld [vmem:[%s3136_s0 + $0x270] sm:$0xff] }
  0x47   :  { %v256_v53 = vsel %vm164_vm15, 1.0, %v1822_v6  ;;  %v100_v11 = vld [vmem:[%s3136_s0 + $0x2b8] sm:$0xff] }
  0x48   :  { %v468_v57 = vsel %vm289_vm0, %v256_v53, inf }
  0x49   :  { %396 = vmin.xlane.f32.xlu1 %v395_v48  ;;  %393 = vmin.xlane.f32.xlu0 %v392_v49  ;;  %v253_v48 = vsel %vm161_vm14, 1.0, %v1822_v6  ;;  %v74_v49 = vld [vmem:[%s3136_s0 + $0x1e8] sm:$0xff]  ;;  %vm175_vm14 = vcmp.eq.f32.partialorder %v83_v17, 0.0 }
  0x4a   :  { %v459_v52 = vsel %vm289_vm0, %v253_v48, inf  ;;  %vm166_vm3 = vcmp.eq.f32.partialorder %v74_v49, 0.0 }
  0x4b   :  { %v258_v59 = vsel %vm166_vm3, 1.0, %v1822_v6 }
  0x4c   :  { %v474_v63 = vsel %vm289_vm0, %v258_v59, inf  ;;  %v95_v59 = vld [vmem:[%s3136_s0 + $0x290] sm:$0xff] }
  0x4d   :  { %402 = vmin.xlane.f32.xlu1 %v401_v54  ;;  %399 = vmin.xlane.f32.xlu0 %v398_v55  ;;  %v255_v54 = vsel %vm163_vm1, 1.0, %v1822_v6  ;;  %v76_v55 = vld [vmem:[%s3136_s0 + $0x1f8] sm:$0xff]  ;;  %vm177_vm1 = vcmp.eq.f32.partialorder %v85_v23, 0.0 }
  0x4e   :  { %v465_v58 = vsel %vm289_vm0, %v255_v54, inf  ;;  %vm168_vm5 = vcmp.eq.f32.partialorder %v76_v55, 0.0 }
  0x4f   :  { %v260_v1 = vsel %vm168_vm5, 1.0, %v1822_v6 }
  0x50   :  { %v480_v5 = vsel %vm289_vm0, %v260_v1, inf }
  0x51   :  { %408 = vmin.xlane.f32.xlu1 %v407_v60  ;;  %405 = vmin.xlane.f32.xlu0 %v404_v61  ;;  %v257_v60 = vsel %vm165_vm4, 1.0, %v1822_v6  ;;  %v78_v61 = vld [vmem:[%s3136_s0 + $0x208] sm:$0xff]  ;;  %vm179_vm4 = vcmp.eq.f32.partialorder %v87_v29, 0.0 }
  0x52   :  { %v471_v0 = vsel %vm289_vm0, %v257_v60, inf  ;;  %vm170_vm7 = vcmp.eq.f32.partialorder %v78_v61, 0.0  ;;  %v271_v41 = vsel %vm179_vm4, 1.0, %v1822_v6 }
  0x53   :  { %v262_v8 = vsel %vm170_vm7, 1.0, %v1822_v6  ;;  %v513_v47 = vsel %vm289_vm0, %v271_v41, inf  ;;  %vm184_vm7 = vcmp.eq.f32.partialorder %v92_v42, 0.0 }
  0x54   :  { %v486_v12 = vsel %vm289_vm0, %v262_v8, inf  ;;  %v276_v56 = vsel %vm184_vm7, 1.0, %v1822_v6 }
  0x55   :  { %414 = vmin.xlane.f32.xlu1 %v413_v2  ;;  %411 = vmin.xlane.f32.xlu0 %v410_v3  ;;  %v259_v2 = vsel %vm167_vm6, 1.0, %v1822_v6  ;;  %v80_v3 = vld [vmem:[%s3136_s0 + $0x218] sm:$0xff]  ;;  %vm181_vm6 = vcmp.eq.f32.partialorder %v89_v35, 0.0  ;;  %v528_v62 = vsel %vm289_vm0, %v276_v56, inf  ;;  %v3141_v56 = vlaneseq }
  0x56   :  { %v477_v7 = vsel %vm289_vm0, %v259_v2, inf  ;;  %vm172_vm9 = vcmp.eq.f32.partialorder %v80_v3, 0.0  ;;  %v273_v49 = vsel %vm181_vm6, 1.0, %v1822_v6  ;;  %v98_v2 = vld [vmem:[%s3136_s0 + $0x2a8] sm:$0xff]  ;;  %v97_v3 = vld [vmem:[%s3136_s0 + $0x2a0] sm:$0xff] }
  0x57   :  { %v264_v14 = vsel %vm172_vm9, 1.0, %v1822_v6  ;;  %v519_v55 = vsel %vm289_vm0, %v273_v49, inf  ;;  %vm186_vm9 = vcmp.eq.f32.partialorder %v94_v50, 0.0 }
  0x58   :  { %v492_v18 = vsel %vm289_vm0, %v264_v14, inf }
  0x59   :  { %420 = vmin.xlane.f32.xlu1 %v419_v9  ;;  %417 = vmin.xlane.f32.xlu0 %v416_v10  ;;  %v261_v9 = vsel %vm169_vm8, 1.0, %v1822_v6  ;;  %v82_v10 = vld [vmem:[%s3136_s0 + $0x228] sm:$0xff]  ;;  %vm183_vm8 = vcmp.eq.f32.partialorder %v91_v43, 0.0 }
  0x5a   :  { %v483_v13 = vsel %vm289_vm0, %v261_v9, inf  ;;  %vm174_vm11 = vcmp.eq.f32.partialorder %v82_v10, 0.0 }
  0x5b   :  { %v266_v20 = vsel %vm174_vm11, 1.0, %v1822_v6 }
  0x5c   :  { %v498_v24 = vsel %vm289_vm0, %v266_v20, inf  ;;  %v101_v20 = vld [vmem:[%s3136_s0 + $0x2c0] sm:$0xff] }
  0x5d   :  { %427 = vmin.xlane.f32.xlu1 %v426_v15  ;;  %423 = vmin.xlane.f32.xlu0 %v422_v16  ;;  %v263_v15 = vsel %vm171_vm10, 1.0, %v1822_v6  ;;  %v84_v16 = vld [vmem:[%s3136_s0 + $0x238] sm:$0xff]  ;;  %vm193_vm4 = vcmp.eq.f32.partialorder %v101_v20, 0.0 }
  0x5e   :  { %v489_v19 = vsel %vm289_vm0, %v263_v15, inf  ;;  %vm176_vm13 = vcmp.eq.f32.partialorder %v84_v16, 0.0 }
  0x5f   :  { %v268_v26 = vsel %vm176_vm13, 1.0, %v1822_v6  ;;  %vm190_vm13 = vcmp.eq.f32.partialorder %v98_v2, 0.0 }
  0x60   :  { %v504_v30 = vsel %vm289_vm0, %v268_v26, inf  ;;  %v282_v17 = vsel %vm190_vm13, 1.0, %v1822_v6 }
  0x61   :  { %433 = vmin.xlane.f32.xlu1 %v432_v21  ;;  %430 = vmin.xlane.f32.xlu0 %v429_v22  ;;  %v265_v21 = vsel %vm173_vm12, 1.0, %v1822_v6  ;;  %v86_v22 = vld [vmem:[%s3136_s0 + $0x248] sm:$0xff]  ;;  %vm187_vm12 = vcmp.eq.f32.partialorder %v95_v59, 0.0  ;;  %v546_v23 = vsel %vm289_vm0, %v282_v17, inf  ;;  %v2358_v59 = vand.u32 127, %v3141_v56 }
  0x62   :  { %v495_v25 = vsel %vm289_vm0, %v265_v21, inf  ;;  %vm178_vm15 = vcmp.eq.f32.partialorder %v86_v22, 0.0  ;;  %v279_v10 = vsel %vm187_vm12, 1.0, %v1822_v6 }
  0x63   :  { %v270_v32 = vsel %vm178_vm15, 1.0, %v1822_v6  ;;  %v537_v16 = vsel %vm289_vm0, %v279_v10, inf  ;;  %vm192_vm15 = vcmp.eq.f32.partialorder %v100_v11, 0.0  ;;  %3150 = vst [vmem:[#allocation5_spill] sm:$0xff] %v2358_v59  ;;  %v2410_v20 = vadd.s32 128, %v2358_v59 }
  0x64   :  { %v510_v38 = vsel %vm289_vm0, %v270_v32, inf }
  0x65   :  { %439 = vmin.xlane.f32.xlu1 %v438_v27  ;;  %436 = vmin.xlane.f32.xlu0 %v435_v28  ;;  %v267_v27 = vsel %vm175_vm14, 1.0, %v1822_v6  ;;  %v88_v28 = vld [vmem:[%s3136_s0 + $0x258] sm:$0xff]  ;;  %vm189_vm14 = vcmp.eq.f32.partialorder %v97_v3, 0.0  ;;  %3159 = vst [vmem:[#allocation14_spill] sm:$0xff] %v2410_v20 }
  0x66   :  { %v501_v31 = vsel %vm289_vm0, %v267_v27, inf  ;;  %vm180_vm3 = vcmp.eq.f32.partialorder %v88_v28, 0.0  ;;  %v104_v27 = vld [vmem:[%s3136_s0 + $0x2d8] sm:$0x3]  ;;  %v103_v28 = vld [vmem:[%s3136_s0 + $0x2d0] sm:$0xff] }
  0x67   :  { %vm195_vm6 = vcmp.eq.f32.partialorder %v103_v28, 0.0 }
  0x68   :  { %v287_v42 = vsel %vm195_vm6, 1.0, %v1822_v6 }
  0x69   :  { %445 = vmin.xlane.f32.xlu1 %v444_v33  ;;  %442 = vmin.xlane.f32.xlu0 %v441_v34  ;;  %v269_v33 = vsel %vm177_vm1, 1.0, %v1822_v6  ;;  %v90_v34 = vld [vmem:[%s3136_s0 + $0x268] sm:$0xff] }
  0x6a   :  { %vm182_vm5 = vcmp.eq.f32.partialorder %v90_v34, 0.0  ;;  %v285_v34 = vsel %vm193_vm4, 1.0, %v1822_v6 }
  0x6b   :  { %v274_v48 = vsel %vm182_vm5, 1.0, %v1822_v6  ;;  %vm196_vm5 = vcmp.eq.f32.partialorder %v104_v27, 0.0 }
  0x6c   :  { %v522_v54 = vsel %vm289_vm0, %v274_v48, inf  ;;  %v288_v41 = vsel %vm196_vm5, 1.0, %v1822_v6  ;;  %v561_v48 = vsel %vm289_vm0, %v287_v42, inf }
  0x6d   :  { %451 = vmin.xlane.f32.xlu1 %v450_v39  ;;  %448 = vmin.xlane.f32.xlu0 %v447_v40  ;;  %v507_v39 = vsel %vm289_vm0, %v269_v33, inf  ;;  %v272_v40 = vsel %vm180_vm3, 1.0, %v1822_v6 }
  0x71   :  { %457 = vmin.xlane.f32.xlu1 %v456_v45  ;;  %454 = vmin.xlane.f32.xlu0 %v453_v46  ;;  %v516_v46 = vsel %vm289_vm0, %v272_v40, inf  ;;  %v555_v40 = vsel %vm289_vm0, %v285_v34, inf }
  0x75   :  { %463 = vmin.xlane.f32.xlu1 %v462_v51  ;;  %460 = vmin.xlane.f32.xlu0 %v459_v52  ;;  %v93_v51 = vld [vmem:[%s3136_s0 + $0x280] sm:$0xff] }
  0x76   :  { %vm185_vm10 = vcmp.eq.f32.partialorder %v93_v51, 0.0 }
  0x77   :  { %v277_v1 = vsel %vm185_vm10, 1.0, %v1822_v6 }
  0x78   :  { %v531_v8 = vsel %vm289_vm0, %v277_v1, inf }
  0x79   :  { %469 = vmin.xlane.f32.xlu1 %v468_v57  ;;  %466 = vmin.xlane.f32.xlu0 %v465_v58  ;;  %v275_v57 = vsel %vm183_vm8, 1.0, %v1822_v6  ;;  %v96_v58 = vld [vmem:[%s3136_s0 + $0x298] sm:$0xff] }
  0x7a   :  { %vm188_vm11 = vcmp.eq.f32.partialorder %v96_v58, 0.0 }
  0x7b   :  { %v280_v9 = vsel %vm188_vm11, 1.0, %v1822_v6 }
  0x7c   :  { %v540_v15 = vsel %vm289_vm0, %v280_v9, inf }
  0x7d   :  { %475 = vmin.xlane.f32.xlu1 %v474_v63  ;;  %472 = vmin.xlane.f32.xlu0 %v471_v0  ;;  %v525_v63 = vsel %vm289_vm0, %v275_v57, inf  ;;  %v278_v0 = vsel %vm186_vm9, 1.0, %v1822_v6 }
  0x81   :  { %481 = vmin.xlane.f32.xlu1 %v480_v5  ;;  %478 = vmin.xlane.f32.xlu0 %v477_v7  ;;  %v534_v7 = vsel %vm289_vm0, %v278_v0, inf  ;;  %v3139_v0 = vmov 0  }
  0x82   :  { %1797 = vset.pattern.permute.xlu1 %v3139_v0  ;;  %1796 = vset.pattern.permute.xlu0 %v3139_v0  ;;  %v2461_v0 = vadd.s32 256, %v2358_v59 }
  0x84   :  { %3168 = vst [vmem:[#allocation23_spill] sm:$0xff] %v2461_v0 }
  0x85   :  { %487 = vmin.xlane.f32.xlu1 %v486_v12  ;;  %484 = vmin.xlane.f32.xlu0 %v483_v13  ;;  %v99_v12 = vld [vmem:[%s3136_s0 + $0x2b0] sm:$0xff] }
  0x86   :  { %vm191_vm1 = vcmp.eq.f32.partialorder %v99_v12, 0.0 }
  0x87   :  { %v283_v26 = vsel %vm191_vm1, 1.0, %v1822_v6 }
  0x88   :  { %v549_v32 = vsel %vm289_vm0, %v283_v26, inf }
  0x89   :  { %493 = vmin.xlane.f32.xlu1 %v492_v18  ;;  %490 = vmin.xlane.f32.xlu0 %v489_v19  ;;  %v281_v18 = vsel %vm189_vm14, 1.0, %v1822_v6  ;;  %v102_v19 = vld [vmem:[%s3136_s0 + $0x2c8] sm:$0xff] }
  0x8a   :  { %vm194_vm3 = vcmp.eq.f32.partialorder %v102_v19, 0.0 }
  0x8b   :  { %v286_v33 = vsel %vm194_vm3, 1.0, %v1822_v6 }
  0x8d   :  { %499 = vmin.xlane.f32.xlu1 %v498_v24  ;;  %496 = vmin.xlane.f32.xlu0 %v495_v25  ;;  %v543_v24 = vsel %vm289_vm0, %v281_v18, inf  ;;  %v284_v25 = vsel %vm192_vm15, 1.0, %v1822_v6 }
  0x91   :  { %505 = vmin.xlane.f32.xlu1 %v504_v30  ;;  %502 = vmin.xlane.f32.xlu0 %v501_v31  ;;  %v552_v31 = vsel %vm289_vm0, %v284_v25, inf }
  0x92   :  { %v2221_v36 = vpop.xlane.xlu1 %297  ;;  %v2223_v37 = vpop.xlane.xlu0 %291 }
  0x93   :  { %vm569_vm7 = vcmp.gt.f32.partialorder %v2221_v36, 0.0 }
  0x95   :  { %511 = vmin.xlane.f32.xlu1 %v510_v38  ;;  %508 = vmin.xlane.f32.xlu0 %v507_v39  ;;  %v558_v39 = vsel %vm289_vm0, %v286_v33, inf  ;;  %vm567_vm0 = vcmp.gt.f32.partialorder %v2223_v37, 0.0 }
  0x96   :  { %v2235_v44 = vpop.xlane.xlu1 %300  ;;  %v2237_v45 = vpop.xlane.xlu0 %294 }
  0x97   :  { %vm570_vm8 = vcmp.gt.f32.partialorder %v2235_v44, 0.0 }
  0x99   :  { %517 = vmin.xlane.f32.xlu1 %v516_v46  ;;  %514 = vmin.xlane.f32.xlu0 %v513_v47  ;;  %v564_v47 = vsel %vm425_vm2, %v288_v41, inf  ;;  %vm568_vm2 = vcmp.gt.f32.partialorder %v2237_v45, 0.0 }
  0x9a   :  { %v2249_v52 = vpop.xlane.xlu1 %306  ;;  %v2251_v53 = vpop.xlane.xlu0 %303 }
  0x9b   :  { %vm571_vm9 = vcmp.gt.f32.partialorder %v2251_v53, 0.0  ;;  %vm572_vm10 = vcmp.gt.f32.partialorder %v2249_v52, 0.0 }
  0x9d   :  { %523 = vmin.xlane.f32.xlu1 %v522_v54  ;;  %520 = vmin.xlane.f32.xlu0 %v519_v55 }
  0x9e   :  { %v2263_v60 = vpop.xlane.xlu1 %312  ;;  %v2265_v61 = vpop.xlane.xlu0 %309 }
  0x9f   :  { %vm573_vm11 = vcmp.gt.f32.partialorder %v2265_v61, 0.0  ;;  %vm574_vm12 = vcmp.gt.f32.partialorder %v2263_v60, 0.0 }
  0xa1   :  { %529 = vmin.xlane.f32.xlu1 %v528_v62  ;;  %526 = vmin.xlane.f32.xlu0 %v525_v63 }
  0xa2   :  { %v2277_v4 = vpop.xlane.xlu1 %318  ;;  %v2279_v5 = vpop.xlane.xlu0 %315 }
  0xa3   :  { %vm575_vm13 = vcmp.gt.f32.partialorder %v2279_v5, 0.0  ;;  %vm576_vm14 = vcmp.gt.f32.partialorder %v2277_v4, 0.0 }
  0xa5   :  { %535 = vmin.xlane.f32.xlu1 %v534_v7  ;;  %532 = vmin.xlane.f32.xlu0 %v531_v8 }
  0xa6   :  { %v2291_v13 = vpop.xlane.xlu1 %324  ;;  %v2293_v14 = vpop.xlane.xlu0 %321 }
  0xa7   :  { %vm577_vm15 = vcmp.gt.f32.partialorder %v2293_v14, 0.0  ;;  %vm578_vm1 = vcmp.gt.f32.partialorder %v2291_v13, 0.0 }
  0xa9   :  { %541 = vmin.xlane.f32.xlu1 %v540_v15  ;;  %538 = vmin.xlane.f32.xlu0 %v537_v16 }
  0xaa   :  { %v2305_v21 = vpop.xlane.xlu1 %330  ;;  %v2307_v22 = vpop.xlane.xlu0 %327 }
  0xab   :  { %vm579_vm3 = vcmp.gt.f32.partialorder %v2307_v22, 0.0  ;;  %vm580_vm4 = vcmp.gt.f32.partialorder %v2305_v21, 0.0 }
  0xad   :  { %547 = vmin.xlane.f32.xlu1 %v546_v23  ;;  %544 = vmin.xlane.f32.xlu0 %v543_v24 }
  0xae   :  { %v2319_v29 = vpop.xlane.xlu1 %336  ;;  %v2321_v30 = vpop.xlane.xlu0 %333 }
  0xaf   :  { %vm581_vm5 = vcmp.gt.f32.partialorder %v2321_v30, 0.0  ;;  %vm582_vm6 = vcmp.gt.f32.partialorder %v2319_v29, 0.0 }
  0xb1   :  { %553 = vmin.xlane.f32.xlu1 %v552_v31  ;;  %550 = vmin.xlane.f32.xlu0 %v549_v32 }
  0xb2   :  { %v2327_v35 = vpop.xlane.xlu1 %342  ;;  %v2329_v38 = vpop.xlane.xlu0 %339 }
  0xb5   :  { %559 = vmin.xlane.f32.xlu1 %v558_v39  ;;  %556 = vmin.xlane.f32.xlu0 %v555_v40 }
  0xb6   :  { %v2335_v43 = vpop.xlane.xlu1 %348  ;;  %v2337_v46 = vpop.xlane.xlu0 %345 }
  0xb9   :  { %565 = vmin.xlane.f32.xlu1 %v564_v47  ;;  %562 = vmin.xlane.f32.xlu0 %v561_v48 }
  0xba   :  { %v2341_v49 = vpop.xlane.xlu1 %354  ;;  %v2343_v50 = vpop.xlane.xlu0 %351 }
  0xbe   :  { %v2345_v51 = vpop.xlane.xlu1 %360  ;;  %v2347_v54 = vpop.xlane.xlu0 %357 }
  0xc2   :  { %v2349_v6 = vpop.xlane.xlu1 %366  ;;  %v2351_v55 = vpop.xlane.xlu0 %363 }
  0xc6   :  { %v2353_v57 = vpop.xlane.xlu1 %372  ;;  %v2355_v58 = vpop.xlane.xlu0 %369 }
  0xca   :  { %v2360_v62 = vpop.xlane.xlu1 %378  ;;  %v2362_v63 = vpop.xlane.xlu0 %375  ;;  %668 = vbcast.lane.b32.xlu1 %v2358_v59, 264 }
  0xce   :  { %v2367_v1 = vpop.xlane.xlu1 %384  ;;  %v2369_v2 = vpop.xlane.xlu0 %381  ;;  %672 = vbcast.lane.b32.xlu1 %v2358_v59, 272 }
  0xcf   :  { %664 = vbcast.lane.b32.xlu0 %v2358_v59, 256 }
  0xd2   :  { %v2373_v3 = vpop.xlane.xlu1 %390  ;;  %v2375_v7 = vpop.xlane.xlu0 %387  ;;  %676 = vbcast.lane.b32.xlu1 %v2358_v59, 280 }
  0xd3   :  { %680 = vbcast.lane.b32.xlu0 %v2358_v59, 288 }
  0xd6   :  { %v2379_v8 = vpop.xlane.xlu1 %396  ;;  %v2381_v9 = vpop.xlane.xlu0 %393  ;;  %684 = vbcast.lane.b32.xlu1 %v2358_v59, 296 }
  0xd7   :  { %688 = vbcast.lane.b32.xlu0 %v2358_v59, 304 }
  0xda   :  { %v2385_v10 = vpop.xlane.xlu1 %402  ;;  %v2387_v11 = vpop.xlane.xlu0 %399  ;;  %692 = vbcast.lane.b32.xlu1 %v2358_v59, 312 }
  0xdb   :  { %3151 = vst [vmem:[#allocation6_spill] sm:$0xff] %v2385_v10  ;;  %3152 = vst [vmem:[#allocation7_spill] sm:$0xff] %v2387_v11  ;;  %696 = vbcast.lane.b32.xlu0 %v2358_v59, 320 }
  0xde   :  { %v2391_v12 = vpop.xlane.xlu1 %408  ;;  %v2393_v15 = vpop.xlane.xlu0 %405  ;;  %700 = vbcast.lane.b32.xlu1 %v2358_v59, 328 }
  0xdf   :  { %3153 = vst [vmem:[#allocation8_spill] sm:$0xff] %v2391_v12  ;;  %3154 = vst [vmem:[#allocation9_spill] sm:$0xff] %v2393_v15  ;;  %704 = vbcast.lane.b32.xlu0 %v2358_v59, 336 }
  0xe2   :  { %v2397_v16 = vpop.xlane.xlu1 %414  ;;  %v2399_v17 = vpop.xlane.xlu0 %411  ;;  %708 = vbcast.lane.b32.xlu1 %v2358_v59, 344 }
  0xe3   :  { %3155 = vst [vmem:[#allocation10_spill] sm:$0xff] %v2397_v16  ;;  %3156 = vst [vmem:[#allocation11_spill] sm:$0xff] %v2399_v17  ;;  %712 = vbcast.lane.b32.xlu0 %v2358_v59, 352 }
  0xe6   :  { %v2403_v18 = vpop.xlane.xlu1 %420  ;;  %v2405_v19 = vpop.xlane.xlu0 %417  ;;  %716 = vbcast.lane.b32.xlu1 %v2358_v59, 360 }
  0xe7   :  { %3157 = vst [vmem:[#allocation12_spill] sm:$0xff] %v2403_v18  ;;  %3158 = vst [vmem:[#allocation13_spill] sm:$0xff] %v2405_v19  ;;  %720 = vbcast.lane.b32.xlu0 %v2358_v59, 368 }
  0xea   :  { %v2412_v23 = vpop.xlane.xlu1 %427  ;;  %v2414_v24 = vpop.xlane.xlu0 %423  ;;  %724 = vbcast.lane.b32.xlu1 %v2358_v59, 376 }
  0xeb   :  { %3160 = vst [vmem:[#allocation15_spill] sm:$0xff] %v2412_v23  ;;  %3161 = vst [vmem:[#allocation16_spill] sm:$0xff] %v2414_v24  ;;  %727 = vbcast.lane.b32.xlu0 %v2410_v20, 256 }
  0xee   :  { %v2418_v25 = vpop.xlane.xlu1 %433  ;;  %v2420_v26 = vpop.xlane.xlu0 %430  ;;  %731 = vbcast.lane.b32.xlu1 %v2410_v20, 264 }
  0xef   :  { %735 = vbcast.lane.b32.xlu0 %v2410_v20, 272 }
  0xf2   :  { %v2424_v27 = vpop.xlane.xlu1 %439  ;;  %v2426_v28 = vpop.xlane.xlu0 %436  ;;  %739 = vbcast.lane.b32.xlu1 %v2410_v20, 280 }
  0xf3   :  { %743 = vbcast.lane.b32.xlu0 %v2410_v20, 288 }
  0xf6   :  { %v2430_v31 = vpop.xlane.xlu1 %445  ;;  %v2432_v32 = vpop.xlane.xlu0 %442  ;;  %747 = vbcast.lane.b32.xlu1 %v2410_v20, 296 }
  0xf7   :  { %751 = vbcast.lane.b32.xlu0 %v2410_v20, 304 }
  0xfa   :  { %v2436_v33 = vpop.xlane.xlu1 %451  ;;  %v2438_v34 = vpop.xlane.xlu0 %448  ;;  %755 = vbcast.lane.b32.xlu1 %v2410_v20, 312 }
  0xfb   :  { %759 = vbcast.lane.b32.xlu0 %v2410_v20, 320 }
  0xfe   :  { %v2442_v39 = vpop.xlane.xlu1 %457  ;;  %v2444_v40 = vpop.xlane.xlu0 %454  ;;  %763 = vbcast.lane.b32.xlu1 %v2410_v20, 328 }
  0xff   :  { %3162 = vst [vmem:[#allocation17_spill] sm:$0xff] %v2442_v39  ;;  %3163 = vst [vmem:[#allocation18_spill] sm:$0xff] %v2444_v40  ;;  %767 = vbcast.lane.b32.xlu0 %v2410_v20, 336 }
 0x102   :  { %v2448_v41 = vpop.xlane.xlu1 %463  ;;  %v2450_v42 = vpop.xlane.xlu0 %460  ;;  %771 = vbcast.lane.b32.xlu1 %v2410_v20, 344 }
 0x103   :  { %3164 = vst [vmem:[#allocation19_spill] sm:$0xff] %v2448_v41  ;;  %3165 = vst [vmem:[#allocation20_spill] sm:$0xff] %v2450_v42  ;;  %775 = vbcast.lane.b32.xlu0 %v2410_v20, 352 }
 0x106   :  { %v2454_v47 = vpop.xlane.xlu1 %469  ;;  %v2456_v48 = vpop.xlane.xlu0 %466  ;;  %779 = vbcast.lane.b32.xlu1 %v2410_v20, 360 }
 0x107   :  { %3166 = vst [vmem:[#allocation21_spill] sm:$0xff] %v2454_v47  ;;  %3167 = vst [vmem:[#allocation22_spill] sm:$0xff] %v2456_v48  ;;  %783 = vbcast.lane.b32.xlu0 %v2410_v20, 368 }
 0x10a   :  { %v2463_v56 = vpop.xlane.xlu1 %475  ;;  %v2465_v23 = vpop.xlane.xlu0 %472  ;;  %787 = vbcast.lane.b32.xlu1 %v2410_v20, 376 }
 0x10b   :  { %3169 = vst [vmem:[#allocation24_spill] sm:$0xff] %v2463_v56  ;;  %3170 = vst [vmem:[#allocation25_spill] sm:$0xff] %v2465_v23  ;;  %790 = vbcast.lane.b32.xlu0 %v2461_v0, 256 }
 0x10e   :  { %v2469_v24 = vpop.xlane.xlu1 %481  ;;  %v2471_v18 = vpop.xlane.xlu0 %478  ;;  %794 = vbcast.lane.b32.xlu1 %v2461_v0, 264 }
 0x10f   :  { %798 = vbcast.lane.b32.xlu0 %v2461_v0, 272 }
 0x112   :  { %v2475_v19 = vpop.xlane.xlu1 %487  ;;  %v2477_v47 = vpop.xlane.xlu0 %484  ;;  %802 = vbcast.lane.b32.xlu1 %v2461_v0, 280 }
 0x113   :  { %806 = vbcast.lane.b32.xlu0 %v2461_v0, 288 }
 0x116   :  { %v2481_v56 = vpop.xlane.xlu1 %493  ;;  %v2483_v20 = vpop.xlane.xlu0 %490  ;;  %810 = vbcast.lane.b32.xlu1 %v2461_v0, 296 }
 0x117   :  { %814 = vbcast.lane.b32.xlu0 %v2461_v0, 304 }
 0x11a   :  { %v2487_v23 = vpop.xlane.xlu1 %499  ;;  %v2489_v16 = vpop.xlane.xlu0 %496  ;;  %818 = vbcast.lane.b32.xlu1 %v2461_v0, 312 }
 0x11b   :  { %3171 = vst [vmem:[#allocation26_spill] sm:$0xff] %v2487_v23  ;;  %822 = vbcast.lane.b32.xlu0 %v2461_v0, 320 }
 0x11e   :  { %v2493_v48 = vpop.xlane.xlu1 %505  ;;  %v2495_v17 = vpop.xlane.xlu0 %502  ;;  %826 = vbcast.lane.b32.xlu1 %v2461_v0, 328 }
 0x11f   :  { %3172 = vst [vmem:[#allocation27_spill] sm:$0xff] %v2493_v48  ;;  %3173 = vst [vmem:[#allocation28_spill] sm:$0xff] %v2495_v17  ;;  %830 = vbcast.lane.b32.xlu0 %v2461_v0, 336 }
 0x122   :  { %v2499_v41 = vpop.xlane.xlu1 %511  ;;  %v2501_v12 = vpop.xlane.xlu0 %508  ;;  %834 = vbcast.lane.b32.xlu1 %v2461_v0, 344 }
 0x123   :  { %3174 = vst [vmem:[#allocation29_spill] sm:$0xff] %v2499_v41  ;;  %3175 = vst [vmem:[#allocation30_spill] sm:$0xff] %v2501_v12  ;;  %838 = vbcast.lane.b32.xlu0 %v2461_v0, 352 }
 0x126   :  { %v2505_v42 = vpop.xlane.xlu1 %517  ;;  %v2507_v15 = vpop.xlane.xlu0 %514  ;;  %842 = vbcast.lane.b32.xlu1 %v2461_v0, 360 }
 0x127   :  { %3176 = vst [vmem:[#allocation31_spill] sm:$0xff] %v2505_v42  ;;  %3177 = vst [vmem:[#allocation32_spill] sm:$0xff] %v2507_v15 }
 0x12a   :  { %v2510_v48 = vpop.xlane.xlu1 %523  ;;  %v2512_v39 = vpop.xlane.xlu0 %520 }
 0x12b   :  { %3178 = vst [vmem:[#allocation33_spill] sm:$0xff] %v2510_v48  ;;  %3179 = vst [vmem:[#allocation34_spill] sm:$0xff] %v2512_v39 }
 0x12e   :  { %v2514_v59 = vpop.xlane.xlu1 %529  ;;  %v2516_v10 = vpop.xlane.xlu0 %526 }
 0x132   :  { %v2518_v41 = vpop.xlane.xlu1 %535  ;;  %v2520_v12 = vpop.xlane.xlu0 %532 }
 0x133   :  { %3180 = vst [vmem:[#allocation35_spill] sm:$0xff] %v2518_v41 }
 0x136   :  { %v2522_v17 = vpop.xlane.xlu1 %541  ;;  %v2524_v40 = vpop.xlane.xlu0 %538 }
 0x137   :  { %3181 = vst [vmem:[#allocation36_spill] sm:$0xff] %v2522_v17 }
 0x13a   :  { %v2526_v42 = vpop.xlane.xlu1 %547  ;;  %v2528_v15 = vpop.xlane.xlu0 %544 }
 0x13b   :  { %3182 = vst [vmem:[#allocation37_spill] sm:$0xff] %v2526_v42 }
 0x13e   :  { %v2530_v0 = vpop.xlane.xlu1 %553  ;;  %v2532_v48 = vpop.xlane.xlu0 %550 }
 0x13f   :  { %3183 = vst [vmem:[#allocation38_spill] sm:$0xff] %v2530_v0  ;;  %3184 = vst [vmem:[#allocation39_spill] sm:$0xff] %v2532_v48 }
 0x142   :  { %v2534_v39 = vpop.xlane.xlu1 %559  ;;  %v2536_v11 = vpop.xlane.xlu0 %556 }
 0x143   :  { %3185 = vst [vmem:[#allocation40_spill] sm:$0xff] %v2534_v39 }
 0x146   :  { %v2538_v23 = vpop.xlane.xlu1 %565  ;;  %v2540_v41 = vpop.xlane.xlu0 %562 }
 0x147   :  { %3186 = vst [vmem:[#allocation41_spill] sm:$0xff] %v2538_v23  ;;  %3187 = vst [vmem:[#allocation42_spill] sm:$0xff] %v2540_v41 }
 0x14a   :  { %v2544_v17 = vpop.permute.xlu1 %668  ;;  %v2546_v42 = vpop.permute.xlu0 %664 }
 0x14b   :  { %v845_v0 = vsel %vm568_vm2, %v2544_v17, 362  ;;  %v844_v48 = vsel %vm567_vm0, %v2546_v42, 362  ;;  %vm583_vm0 = vcmp.gt.f32.partialorder %v2329_v38, 0.0  ;;  %vm584_vm2 = vcmp.gt.f32.partialorder %v2327_v35, 0.0 }
 0x14c   :  { %940 = vperm.xlu1 %1797, %v845_v0   ;;  %937 = vperm.xlu0 %1796, %v844_v48  }
 0x14e   :  { %v2551_v39 = vpop.permute.xlu1 %672  ;;  %v2553_v23 = vpop.permute.xlu0 %680 }
 0x14f   :  { %v846_v37 = vsel %vm569_vm7, %v2551_v39, 362  ;;  %v848_v48 = vsel %vm571_vm9, %v2553_v23, 362  ;;  %vm585_vm7 = vcmp.gt.f32.partialorder %v2337_v46, 0.0  ;;  %vm587_vm9 = vcmp.gt.f32.partialorder %v2343_v50, 0.0 }
 0x150   :  { %943 = vperm.xlu1 %1797, %v846_v37  }
 0x152   :  { %v2558_v45 = vpop.permute.xlu1 %676  ;;  %v2560_v41 = vpop.permute.xlu0 %688 }
 0x153   :  { %v847_v0 = vsel %vm570_vm8, %v2558_v45, 362  ;;  %v850_v53 = vsel %vm573_vm11, %v2560_v41, 362  ;;  %vm586_vm8 = vcmp.gt.f32.partialorder %v2335_v43, 0.0  ;;  %vm589_vm11 = vcmp.gt.f32.partialorder %v2347_v54, 0.0 }
 0x154   :  { %946 = vperm.xlu0 %1796, %v847_v0   ;;  %949 = vperm.xlu1 %1797, %v848_v48  }
 0x156   :  { %v2566_v36 = vpop.permute.xlu1 %684  ;;  %v2568_v37 = vpop.permute.xlu0 %696 }
 0x157   :  { %v849_v44 = vsel %vm572_vm10, %v2566_v36, 362  ;;  %v852_v61 = vsel %vm575_vm13, %v2568_v37, 362  ;;  %vm588_vm10 = vcmp.gt.f32.partialorder %v2341_v49, 0.0  ;;  %vm591_vm13 = vcmp.gt.f32.partialorder %v2351_v55, 0.0 }
 0x158   :  { %952 = vperm.xlu0 %1796, %v849_v44   ;;  %955 = vperm.xlu1 %1797, %v850_v53  }
 0x15a   :  { %v2574_v0 = vpop.permute.xlu1 %692  ;;  %v2576_v48 = vpop.permute.xlu0 %704 }
 0x15b   :  { %v851_v52 = vsel %vm574_vm12, %v2574_v0, 362  ;;  %v854_v5 = vsel %vm577_vm15, %v2576_v48, 362  ;;  %vm590_vm12 = vcmp.gt.f32.partialorder %v2345_v51, 0.0  ;;  %vm593_vm15 = vcmp.gt.f32.partialorder %v2355_v58, 0.0 }
 0x15c   :  { %958 = vperm.xlu0 %1796, %v851_v52   ;;  %961 = vperm.xlu1 %1797, %v852_v61  }
 0x15e   :  { %v2582_v44 = vpop.permute.xlu1 %700  ;;  %v2584_v53 = vpop.permute.xlu0 %712 }
 0x15f   :  { %v853_v60 = vsel %vm576_vm14, %v2582_v44, 362  ;;  %v856_v14 = vsel %vm579_vm3, %v2584_v53, 362  ;;  %vm592_vm14 = vcmp.gt.f32.partialorder %v2349_v6, 0.0  ;;  %vm595_vm3 = vcmp.gt.f32.partialorder %v2362_v63, 0.0 }
 0x160   :  { %964 = vperm.xlu0 %1796, %v853_v60   ;;  %967 = vperm.xlu1 %1797, %v854_v5  }
 0x162   :  { %v2590_v52 = vpop.permute.xlu1 %708  ;;  %v2592_v61 = vpop.permute.xlu0 %720 }
 0x163   :  { %v855_v4 = vsel %vm578_vm1, %v2590_v52, 362  ;;  %v858_v22 = vsel %vm581_vm5, %v2592_v61, 362  ;;  %vm594_vm1 = vcmp.gt.f32.partialorder %v2353_v57, 0.0  ;;  %vm597_vm5 = vcmp.gt.f32.partialorder %v2369_v2, 0.0 }
 0x164   :  { %970 = vperm.xlu0 %1796, %v855_v4   ;;  %973 = vperm.xlu1 %1797, %v856_v14  }
 0x166   :  { %v2598_v60 = vpop.permute.xlu1 %716  ;;  %v2600_v5 = vpop.permute.xlu0 %727 }
 0x167   :  { %v857_v13 = vsel %vm580_vm4, %v2598_v60, 362  ;;  %v860_v30 = vsel %vm583_vm0, %v2600_v5, 362  ;;  %vm596_vm4 = vcmp.gt.f32.partialorder %v2360_v62, 0.0  ;;  %vm599_vm0 = vcmp.gt.f32.partialorder %v2375_v7, 0.0 }
 0x168   :  { %976 = vperm.xlu0 %1796, %v857_v13   ;;  %979 = vperm.xlu1 %1797, %v858_v22  }
 0x16a   :  { %v2606_v4 = vpop.permute.xlu1 %724  ;;  %v2608_v14 = vpop.permute.xlu0 %735 }
 0x16b   :  { %3188 = vst [vmem:[#allocation43_spill] sm:$0xff] %v2606_v4  ;;  %v859_v21 = vsel %vm582_vm6, %v2606_v4, 362  ;;  %v862_v38 = vsel %vm585_vm7, %v2608_v14, 362  ;;  %vm598_vm6 = vcmp.gt.f32.partialorder %v2367_v1, 0.0  ;;  %vm613_vm7 = vcmp.gt.f32.partialorder %v2420_v26, 0.0 }
 0x16c   :  { %982 = vperm.xlu0 %1796, %v859_v21   ;;  %985 = vperm.xlu1 %1797, %v860_v30   ;;  %v890_v2 = vsel %vm613_vm7, %v2546_v42, 362  ;;  %vm635_vm7 = vcmp.gt.f32.partialorder %v2489_v16, 0.0  ;;  %v3189_v16 = vld [vmem:[#allocation26_spill] sm:$0xff] }
 0x16e   :  { %v2614_v13 = vpop.permute.xlu1 %731  ;;  %v2616_v22 = vpop.permute.xlu0 %743 }
 0x16f   :  { %v861_v29 = vsel %vm584_vm2, %v2614_v13, 362  ;;  %v864_v46 = vsel %vm587_vm9, %v2616_v22, 362  ;;  %vm614_vm2 = vcmp.gt.f32.partialorder %v2418_v25, 0.0  ;;  %vm629_vm9 = vcmp.gt.f32.partialorder %v2471_v18, 0.0 }
 0x170   :  { %988 = vperm.xlu0 %1796, %v861_v29   ;;  %991 = vperm.xlu1 %1797, %v862_v38   ;;  %v906_v1 = vsel %vm629_vm9, %v2600_v5, 362  ;;  %vm647_vm9 = vcmp.gt.f32.partialorder %v2520_v12, 0.0  ;;  %v3191_v12 = vld [vmem:[#allocation35_spill] sm:$0xff] }
 0x172   :  { %v2622_v21 = vpop.permute.xlu1 %739  ;;  %v2624_v30 = vpop.permute.xlu0 %751 }
 0x173   :  { %v863_v35 = vsel %vm586_vm8, %v2622_v21, 362  ;;  %v866_v50 = vsel %vm589_vm11, %v2624_v30, 362  ;;  %vm630_vm8 = vcmp.gt.f32.partialorder %v2469_v24, 0.0  ;;  %vm631_vm11 = vcmp.gt.f32.partialorder %v2477_v47, 0.0 }
 0x174   :  { %994 = vperm.xlu0 %1796, %v863_v35   ;;  %997 = vperm.xlu1 %1797, %v864_v46   ;;  %v907_v7 = vsel %vm630_vm8, %v2614_v13, 362  ;;  %vm602_vm8 = vcmp.gt.f32.partialorder %v2379_v8, 0.0  ;;  %v3190_v8 = vld [vmem:[#allocation7_spill] sm:$0xff] }
 0x176   :  { %v2630_v29 = vpop.permute.xlu1 %747  ;;  %v2632_v38 = vpop.permute.xlu0 %759 }
 0x177   :  { %v865_v43 = vsel %vm588_vm10, %v2630_v29, 362  ;;  %v868_v54 = vsel %vm591_vm13, %v2632_v38, 362  ;;  %vm615_vm10 = vcmp.gt.f32.partialorder %v2426_v28, 0.0  ;;  %vm632_vm13 = vcmp.gt.f32.partialorder %v2475_v19, 0.0 }
 0x178   :  { %1000 = vperm.xlu0 %1796, %v865_v43   ;;  %1003 = vperm.xlu1 %1797, %v866_v50   ;;  %v892_v25 = vsel %vm615_vm10, %v2551_v39, 362  ;;  %v909_v24 = vsel %vm632_vm13, %v2622_v21, 362  ;;  %vm620_vm10 = vcmp.gt.f32.partialorder %v2436_v33, 0.0  ;;  %vm648_vm13 = vcmp.gt.f32.partialorder %v3191_v12, 0.0  ;;  %v3192_v33 = vld [vmem:[#allocation18_spill] sm:$0xff]  ;;  %v3203_v12 = vld [vmem:[#allocation8_spill] sm:$0xff] }
 0x17a   :  { %v2638_v35 = vpop.permute.xlu1 %755  ;;  %v2640_v46 = vpop.permute.xlu0 %767 }
 0x17b   :  { %v867_v49 = vsel %vm590_vm12, %v2638_v35, 362  ;;  %v870_v55 = vsel %vm593_vm15, %v2640_v46, 362  ;;  %vm616_vm12 = vcmp.gt.f32.partialorder %v2424_v27, 0.0  ;;  %vm633_vm15 = vcmp.gt.f32.partialorder %v2483_v20, 0.0 }
 0x17c   :  { %1006 = vperm.xlu0 %1796, %v867_v49   ;;  %1009 = vperm.xlu1 %1797, %v868_v54   ;;  %v893_v18 = vsel %vm616_vm12, %v2558_v45, 362  ;;  %v910_v28 = vsel %vm633_vm15, %v2616_v22, 362  ;;  %v912_v45 = vsel %vm635_vm7, %v2624_v30, 362  ;;  %vm603_vm12 = vcmp.gt.f32.partialorder %v3190_v8, 0.0  ;;  %v3193_v30 = vld [vmem:[#allocation28_spill] sm:$0xff] }
 0x17d   :  { %vm637_vm15 = vcmp.gt.f32.partialorder %v3193_v30, 0.0 }
 0x17e   :  { %v2646_v43 = vpop.permute.xlu1 %763  ;;  %v2648_v50 = vpop.permute.xlu0 %775 }
 0x17f   :  { %v869_v51 = vsel %vm592_vm14, %v2646_v43, 362  ;;  %v872_v58 = vsel %vm595_vm3, %v2648_v50, 362  ;;  %vm617_vm14 = vcmp.gt.f32.partialorder %v2432_v32, 0.0  ;;  %vm618_vm3 = vcmp.gt.f32.partialorder %v2430_v31, 0.0 }
 0x180   :  { %1012 = vperm.xlu0 %1796, %v869_v51   ;;  %1015 = vperm.xlu1 %1797, %v870_v55   ;;  %v894_v26 = vsel %vm617_vm14, %v2553_v23, 362  ;;  %v895_v27 = vsel %vm618_vm3, %v2566_v36, 362  ;;  %vm621_vm14 = vcmp.gt.f32.partialorder %v3192_v33, 0.0  ;;  %vm649_vm3 = vcmp.gt.f32.partialorder %v2524_v40, 0.0 }
 0x182   :  { %v2654_v49 = vpop.permute.xlu1 %771  ;;  %v2656_v54 = vpop.permute.xlu0 %783 }
 0x183   :  { %v871_v6 = vsel %vm594_vm1, %v2654_v49, 362  ;;  %v874_v63 = vsel %vm597_vm5, %v2656_v54, 362  ;;  %vm600_vm1 = vcmp.gt.f32.partialorder %v2373_v3, 0.0  ;;  %vm645_vm5 = vcmp.gt.f32.partialorder %v2516_v10, 0.0 }
 0x184   :  { %1018 = vperm.xlu0 %1796, %v871_v6   ;;  %1021 = vperm.xlu1 %1797, %v872_v58   ;;  %v891_v58 = vsel %vm614_vm2, %v2544_v17, 362  ;;  %v908_v17 = vsel %vm631_vm11, %v2608_v14, 362  ;;  %vm619_vm2 = vcmp.gt.f32.partialorder %v2438_v34, 0.0  ;;  %vm636_vm11 = vcmp.gt.f32.partialorder %v3189_v16, 0.0 }
 0x185   :  { %v896_v47 = vsel %vm619_vm2, %v2560_v41, 362  ;;  %v897_v41 = vsel %vm620_vm10, %v2574_v0, 362  ;;  %v913_v5 = vsel %vm636_vm11, %v2638_v35, 362  ;;  %v898_v0 = vsel %vm621_vm14, %v2568_v37, 362  ;;  %v3196_v37 = vld [vmem:[#allocation5_spill] sm:$0xff] }
 0x186   :  { %v2662_v51 = vpop.permute.xlu1 %779  ;;  %v791_v55 = vpop.permute.xlu0 %790  ;;  %vm1221_vm2 = vcmask 130112   ;;  %v1244_v8 = vadd.s32 4294967256, %v3196_v37  ;;  %vm606_vm10 = vcmp.gt.f32.partialorder %v3203_v12, 0.0  ;;  %vm651_vm11 = vcmp.gt.f32.partialorder %v2528_v15, 0.0 }
 0x187   :  { %v873_v57 = vsel %vm596_vm4, %v2662_v51, 362  ;;  %v876_v62 = vsel %vm599_vm0, %v791_v55, 362  ;;  %vm634_vm4 = vcmp.gt.f32.partialorder %v2481_v56, 0.0  ;;  %v922_v23 = vsel %vm645_vm5, %v791_v55, 362 }
 0x188   :  { %1024 = vperm.xlu0 %1796, %v873_v57   ;;  %1027 = vperm.xlu1 %1797, %v874_v63   ;;  %v911_v20 = vsel %vm634_vm4, %v2630_v29, 362  ;;  %vm646_vm0 = vcmp.gt.f32.partialorder %v2514_v59, 0.0  ;;  %v914_v29 = vsel %vm637_vm15, %v2632_v38, 362  ;;  %v3194_v63 = vld [vmem:[#allocation6_spill] sm:$0xff]  ;;  %v3197_v38 = vld [vmem:[#allocation17_spill] sm:$0xff] }
 0x189   :  { %vm622_vm4 = vcmp.gt.f32.partialorder %v3197_v38, 0.0  ;;  %v1279_v38 = vadd.s32 4294967216, %v3196_v37 }
 0x18a   :  { %v2668_v4 = vpop.permute.xlu1 %787  ;;  %v799_v32 = vpop.permute.xlu0 %798 }
 0x18b   :  { %v875_v6 = vsel %vm598_vm6, %v2668_v4, 362  ;;  %vm601_vm6 = vcmp.gt.f32.partialorder %v2381_v9, 0.0  ;;  %v924_v59 = vsel %vm647_vm9, %v799_v32, 362  ;;  %vm1228_vm9 = vcmask 195712  }
 0x18c   :  { %1030 = vperm.xlu0 %1796, %v875_v6   ;;  %1033 = vperm.xlu1 %1797, %v876_v62   ;;  %v878_v31 = vsel %vm601_vm6, %v799_v32, 362  ;;  %v3195_v62 = vlaneseq }
 0x18e   :  { %v795_v39 = vpop.permute.xlu1 %794  ;;  %v807_v56 = vpop.permute.xlu0 %806 }
 0x18f   :  { %v877_v19 = vsel %vm600_vm1, %v795_v39, 362  ;;  %v923_v3 = vsel %vm646_vm0, %v795_v39, 362  ;;  %v880_v21 = vsel %vm603_vm12, %v807_v56, 362  ;;  %vm604_vm1 = vcmp.gt.f32.partialorder %v3194_v63, 0.0  ;;  %v3200_v39 = vld [vmem:[#allocation36_spill] sm:$0xff] }
 0x190   :  { %1075 = vperm.xlu0 %1796, %v890_v2   ;;  %1078 = vperm.xlu1 %1797, %v891_v58   ;;  %v926_v55 = vsel %vm649_vm3, %v807_v56, 362  ;;  %v2730_v2 = vshrl.u32 %v3195_v62, 7  ;;  %v1216_v58 = vadd.s32 4294967288, %v3196_v37  ;;  %vm650_vm0 = vcmp.gt.f32.partialorder %v3200_v39, 0.0  ;;  %v3202_v56 = vld [vmem:[#allocation30_spill] sm:$0xff] }
 0x191   :  { %vm1235_vm12 = vcmask 261312   ;;  %vm1256_vm3 = vcmask 458112  }
 0x192   :  { %v803_v42 = vpop.permute.xlu1 %802  ;;  %v2705_v36 = vpop.permute.xlu0 %814  ;;  %v2785_v15 = vsub.s32 %v1244_v8, %v2730_v2  ;;  %v3209_v8 = vld [vmem:[#allocation32_spill] sm:$0xff] }
 0x193   :  { %v879_v9 = vsel %vm602_vm8, %v803_v42, 362  ;;  %v925_v22 = vsel %vm648_vm13, %v803_v42, 362  ;;  %v1237_v42 = vadd.s32 4294967264, %v3196_v37  ;;  %vm639_vm8 = vcmp.gt.f32.partialorder %v3202_v56, 0.0 }
 0x194   :  { %1123 = vperm.xlu0 %1796, %v906_v1   ;;  %1126 = vperm.xlu1 %1797, %v907_v7   ;;  %v3198_v1 = vld [vmem:[#allocation27_spill] sm:$0xff]  ;;  %v928_v33 = vsel %vm651_vm11, %v2705_v36, 362  ;;  %vm1242_vm13 = vcmask 326912   ;;  %vm3149_vm11 = vcmask 720512  }
 0x195   :  { %vm638_vm5 = vcmp.gt.f32.partialorder %v3198_v1, 0.0 }
 0x196   :  { %v811_v10 = vpop.permute.xlu1 %810  ;;  %v2715_v14 = vpop.permute.xlu0 %822  ;;  %v915_v40 = vsel %vm638_vm5, %v2646_v43, 362 }
 0x197   :  { %v881_v6 = vsel %vm604_vm1, %v811_v10, 362  ;;  %vm1249_vm1 = vcmask 392512  }
 0x198   :  { %1081 = vperm.xlu0 %1796, %v892_v25   ;;  %1129 = vperm.xlu1 %1797, %v908_v17   ;;  %v899_v17 = vsel %vm622_vm4, %v2582_v44, 362 }
 0x19a   :  { %v2707_v34 = vpop.permute.xlu1 %818  ;;  %v2723_v35 = vpop.permute.xlu0 %830 }
 0x19b   :  { %v883_v30 = vsel %vm606_vm10, %v2707_v34, 362  ;;  %vm1277_vm10 = vcmask 654912  }
 0x19c   :  { %1084 = vperm.xlu0 %1796, %v893_v18   ;;  %1132 = vperm.xlu1 %1797, %v909_v24   ;;  %v1223_v18 = vadd.s32 4294967280, %v3196_v37  ;;  %v2743_v24 = vsub.s32 %v1216_v58, %v2730_v2 }
 0x19e   :  { %v2717_v13 = vpop.permute.xlu1 %826  ;;  %v2735_v7 = vpop.permute.xlu0 %838 }
 0x1a0   :  { %1087 = vperm.xlu0 %1796, %v894_v26   ;;  %1135 = vperm.xlu1 %1797, %v910_v28   ;;  %v2747_v26 = vsub.s32 %v3196_v37, %v2730_v2  ;;  %v3199_v28 = vld [vmem:[#allocation9_spill] sm:$0xff] }
 0x1a1   :  { %vm605_vm6 = vcmp.gt.f32.partialorder %v3199_v28, 0.0 }
 0x1a2   :  { %v2725_v57 = vpop.permute.xlu1 %834  ;;  %v882_v43 = vsel %vm605_vm6, %v2705_v36, 362  ;;  %v3205_v36 = vld [vmem:[#allocation29_spill] sm:$0xff]  ;;  %vm1263_vm6 = vcmask 523712  }
 0x1a3   :  { %vm640_vm15 = vcmp.gt.f32.partialorder %v3205_v36, 0.0  ;;  %v3211_v36 = vld [vmem:[#allocation39_spill] sm:$0xff] }
 0x1a4   :  { %1036 = vperm.xlu0 %1796, %v877_v19   ;;  %1090 = vperm.xlu1 %1797, %v895_v27   ;;  %v927_v27 = vsel %vm650_vm0, %v811_v10, 362  ;;  %v917_v28 = vsel %vm640_vm15, %v2654_v49, 362  ;;  %v2808_v49 = vsub.s32 %v1279_v38, %v2730_v2  ;;  %vm1270_vm0 = vcmask 589312  }
 0x1a5   :  { %vm653_vm15 = vcmp.gt.f32.partialorder %v3211_v36, 0.0 }
 0x1a6   :  { %v2737_v25 = vpop.permute.xlu1 %842 }
 0x1a8   :  { %1138 = vperm.xlu0 %1796, %v911_v20   ;;  %1171 = vperm.xlu1 %1797, %v922_v23   ;;  %v2753_v20 = vsub.s32 %v1223_v18, %v2730_v2 }
 0x1ac   :  { %1174 = vperm.xlu0 %1796, %v923_v3   ;;  %1039 = vperm.xlu1 %1797, %v878_v31   ;;  %v1230_v3 = vadd.s32 4294967272, %v3196_v37  ;;  %v3201_v31 = vld [vmem:[#allocation20_spill] sm:$0xff] }
 0x1ad   :  { %vm623_vm7 = vcmp.gt.f32.partialorder %v3201_v31, 0.0 }
 0x1b0   :  { %1093 = vperm.xlu0 %1796, %v896_v47   ;;  %1141 = vperm.xlu1 %1797, %v912_v45   ;;  %v900_v45 = vsel %vm623_vm7, %v2576_v48, 362 }
 0x1b4   :  { %1177 = vperm.xlu0 %1796, %v924_v59   ;;  %1042 = vperm.xlu1 %1797, %v879_v9   ;;  %v916_v59 = vsel %vm639_vm8, %v2640_v46, 362  ;;  %v1251_v9 = vadd.s32 4294967248, %v3196_v37  ;;  %v1265_v46 = vadd.s32 4294967232, %v3196_v37  ;;  %vm641_vm8 = vcmp.gt.f32.partialorder %v3209_v8, 0.0 }
 0x1b6   :  { %v2792_v58 = vsub.s32 %v1265_v46, %v2730_v2 }
 0x1b8   :  { %1096 = vperm.xlu0 %1796, %v897_v41   ;;  %1144 = vperm.xlu1 %1797, %v913_v5   ;;  %v2767_v41 = vsub.s32 %v1237_v42, %v2730_v2  ;;  %v2770_v5 = vsub.s32 %v1230_v3, %v2730_v2 }
 0x1bc   :  { %1180 = vperm.xlu0 %1796, %v925_v22   ;;  %1045 = vperm.xlu1 %1797, %v880_v21  }
 0x1c0   :  { %1099 = vperm.xlu0 %1796, %v898_v0   ;;  %1147 = vperm.xlu1 %1797, %v914_v29   ;;  %v2780_v0 = vsub.s32 %v1251_v9, %v2730_v2  ;;  %v1286_v9 = vadd.s32 4294967208, %v3196_v37 }
 0x1c4   :  { %1183 = vperm.xlu0 %1796, %v926_v55   ;;  %1048 = vperm.xlu1 %1797, %v881_v6   ;;  %v1258_v55 = vadd.s32 4294967240, %v3196_v37  ;;  %v3204_v6 = vld [vmem:[#allocation19_spill] sm:$0xff] }
 0x1c5   :  { %vm624_vm14 = vcmp.gt.f32.partialorder %v3204_v6, 0.0  ;;  %v3210_v6 = vld [vmem:[#allocation10_spill] sm:$0xff] }
 0x1c6   :  { %v901_v18 = vsel %vm624_vm14, %v2590_v52, 362  ;;  %vm608_vm14 = vcmp.gt.f32.partialorder %v3210_v6, 0.0 }
 0x1c8   :  { %1102 = vperm.xlu0 %1796, %v899_v17   ;;  %1150 = vperm.xlu1 %1797, %v915_v40  }
 0x1cb   :  { %v941_v19 = vpop.permute.xlu1 %940  ;;  %v938_v44 = vpop.permute.xlu0 %937 }
 0x1cc   :  { %v1220_v23 = vrot.slane %v941_v19, %v2743_v24  ;;  %v1215_v32 = vrot.slane %v938_v44, %v2747_v26  ;;  %1186 = vperm.xlu0 %1796, %v927_v27   ;;  %1051 = vperm.xlu1 %1797, %v882_v43   ;;  %v2801_v44 = vsub.s32 %v1258_v55, %v2730_v2  ;;  %v1272_v27 = vadd.s32 4294967224, %v3196_v37  ;;  %v3206_v43 = vld [vmem:[#allocation11_spill] sm:$0xff] }
 0x1cd   :  { %vm607_vm4 = vcmp.gt.f32.partialorder %v3206_v43, 0.0  ;;  %v1300_v55 = vadd.s32 4294967192, %v3196_v37  ;;  %v3212_v43 = vld [vmem:[#allocation21_spill] sm:$0xff] }
 0x1ce   :  { %v1222_v10 = vsel %vm1221_vm2, %v1220_v23, %v1215_v32  ;;  %v3207_v23 = vld [vmem:[#allocation37_spill] sm:$0xff]  ;;  %v884_v56 = vsel %vm607_vm4, %v2715_v14, 362  ;;  %vm3147_vm4 = vcmask 786112  }
 0x1cf   :  { %v944_v47 = vpop.permute.xlu1 %943  ;;  %vm652_vm5 = vcmp.gt.f32.partialorder %v3207_v23, 0.0  ;;  %v3213_v23 = vld [vmem:[#allocation31_spill] sm:$0xff] }
 0x1d0   :  { %v1227_v16 = vrot.slane %v944_v47, %v2753_v20  ;;  %1105 = vperm.xlu0 %1796, %v900_v45   ;;  %1153 = vperm.xlu1 %1797, %v916_v59   ;;  %v929_v31 = vsel %vm652_vm5, %v2707_v34, 362  ;;  %v2817_v59 = vsub.s32 %v1272_v27, %v2730_v2  ;;  %vm3148_vm5 = vcmask 851712  }
 0x1d1   :  { %v1314_v27 = vadd.s32 4294967176, %v3196_v37 }
 0x1d2   :  { %v1229_v48 = vsel %vm1228_vm9, %v1227_v16, %v1222_v10  ;;  %v1293_v10 = vadd.s32 4294967200, %v3196_v37  ;;  %v3208_v16 = vld [vmem:[#allocation22_spill] sm:$0xff] }
 0x1d3   :  { %v950_v22 = vpop.permute.xlu1 %949  ;;  %v947_v21 = vpop.permute.xlu0 %946  ;;  %vm625_vm7 = vcmp.gt.f32.partialorder %v3208_v16, 0.0 }
 0x1d4   :  { %v1241_v29 = vrot.slane %v950_v22, %v2767_v41  ;;  %v1234_v63 = vrot.slane %v947_v21, %v2770_v5  ;;  %1189 = vperm.xlu0 %1796, %v928_v33   ;;  %1054 = vperm.xlu1 %1797, %v883_v30   ;;  %v902_v12 = vsel %vm625_vm7, %v2584_v53, 362  ;;  %v918_v33 = vsel %vm641_vm8, %v2648_v50, 362 }
 0x1d5   :  { %v2828_v30 = vsub.s32 %v1293_v10, %v2730_v2  ;;  %v2833_v53 = vsub.s32 %v1286_v9, %v2730_v2  ;;  %vm626_vm7 = vcmp.gt.f32.partialorder %v3212_v43, 0.0  ;;  %vm642_vm8 = vcmp.gt.f32.partialorder %v3213_v23, 0.0  ;;  %v3215_v9 = vld [vmem:[#allocation38_spill] sm:$0xff] }
 0x1d6   :  { %v1236_v62 = vsel %vm1235_vm12, %v1234_v63, %v1229_v48  ;;  %v1307_v48 = vadd.s32 4294967184, %v3196_v37 }
 0x1d7   :  { %v956_v1 = vpop.permute.xlu1 %955  ;;  %v1243_v17 = vsel %vm1242_vm13, %v1241_v29, %v1236_v62  ;;  %v953_v40 = vpop.permute.xlu0 %952 }
 0x1d8   :  { %v1255_v39 = vrot.slane %v956_v1, %v2780_v0  ;;  %v1248_v19 = vrot.slane %v953_v40, %v2785_v15  ;;  %1108 = vperm.xlu0 %1796, %v901_v18   ;;  %1156 = vperm.xlu1 %1797, %v917_v28   ;;  %v2840_v62 = vsub.s32 %v1307_v48, %v2730_v2  ;;  %v930_v40 = vsel %vm653_vm15, %v2715_v14, 362 }
 0x1d9   :  { %v885_v18 = vsel %vm608_vm14, %v2717_v13, 362  ;;  %vm1305_vm14 = vcmask 917312   ;;  %vm1312_vm15 = vcmask 982912  }
 0x1da   :  { %v1250_v52 = vsel %vm1249_vm1, %v1248_v19, %v1243_v17  ;;  %v2848_v19 = vsub.s32 %v1300_v55, %v2730_v2 }
 0x1db   :  { %v962_v32 = vpop.permute.xlu1 %961  ;;  %v1257_v42 = vsel %vm1256_vm3, %v1255_v39, %v1250_v52  ;;  %v959_v3 = vpop.permute.xlu0 %958 }
 0x1dc   :  { %v1269_v47 = vrot.slane %v962_v32, %v2792_v58  ;;  %v1262_v45 = vrot.slane %v959_v3, %v2801_v44  ;;  %1192 = vperm.xlu0 %1796, %v929_v31   ;;  %1057 = vperm.xlu1 %1797, %v884_v56   ;;  %v903_v3 = vsel %vm626_vm7, %v2598_v60, 362  ;;  %v919_v31 = vsel %vm642_vm8, %v2662_v51, 362 }
 0x1dd   :  { %vm1319_vm7 = vcmask 1048512  }
 0x1de   :  { %v1264_v34 = vsel %vm1263_vm6, %v1262_v45, %v1257_v42  ;;  %v3214_v45 = vld [vmem:[#allocation13_spill] sm:$0xff] }
 0x1df   :  { %v968_v46 = vpop.permute.xlu1 %967  ;;  %v1271_v22 = vsel %vm1270_vm0, %v1269_v47, %v1264_v34  ;;  %v965_v21 = vpop.permute.xlu0 %964  ;;  %v2860_v47 = vsub.s32 %v1314_v27, %v2730_v2  ;;  %v3220_v27 = vld [vmem:[#allocation33_spill] sm:$0xff] }
 0x1e0   :  { %v1283_v29 = vrot.slane %v968_v46, %v2808_v49  ;;  %v1276_v63 = vrot.slane %v965_v21, %v2817_v59  ;;  %1111 = vperm.xlu0 %1796, %v902_v12   ;;  %1159 = vperm.xlu1 %1797, %v918_v33   ;;  %v3216_v46 = vld [vmem:[#allocation25_spill] sm:$0xff] }
 0x1e1   :  { %vm627_vm8 = vcmp.gt.f32.partialorder %v3216_v46, 0.0 }
 0x1e2   :  { %v1278_v50 = vsel %vm1277_vm10, %v1276_v63, %v1271_v22  ;;  %v3217_v22 = vld [vmem:[#allocation34_spill] sm:$0xff]  ;;  %v904_v63 = vsel %vm627_vm8, %v2592_v61, 362  ;;  %vm644_vm8 = vcmp.gt.f32.partialorder %v3220_v27, 0.0 }
 0x1e3   :  { %v974_v38 = vpop.permute.xlu1 %973  ;;  %v1285_v1 = vsel %vm3149_vm11, %v1283_v29, %v1278_v50  ;;  %v971_v17 = vpop.permute.xlu0 %970  ;;  %vm643_vm11 = vcmp.gt.f32.partialorder %v3217_v22, 0.0  ;;  %v3218_v50 = vld [vmem:[#allocation12_spill] sm:$0xff] }
 0x1e4   :  { %v1297_v28 = vrot.slane %v974_v38, %v2828_v30  ;;  %v1290_v39 = vrot.slane %v971_v17, %v2833_v53  ;;  %1195 = vperm.xlu0 %1796, %v930_v40   ;;  %1060 = vperm.xlu1 %1797, %v885_v18   ;;  %v920_v55 = vsel %vm643_vm11, %v2656_v54, 362 }
 0x1e6   :  { %v1292_v14 = vsel %vm3147_vm4, %v1290_v39, %v1285_v1  ;;  %vm609_vm4 = vcmp.gt.f32.partialorder %v3214_v45, 0.0  ;;  %v3219_v39 = vld [vmem:[#allocation24_spill] sm:$0xff] }
 0x1e7   :  { %v980_v52 = vpop.permute.xlu1 %979  ;;  %v1299_v32 = vsel %vm3148_vm5, %v1297_v28, %v1292_v14  ;;  %v977_v42 = vpop.permute.xlu0 %976  ;;  %vm654_vm5 = vcmp.gt.f32.partialorder %v3215_v9, 0.0  ;;  %v886_v60 = vsel %vm609_vm4, %v2723_v35, 362  ;;  %vm610_vm4 = vcmp.gt.f32.partialorder %v3218_v50, 0.0  ;;  %v3221_v14 = vld [vmem:[#allocation43_spill] sm:$0xff] }
 0x1e8   :  { %v1311_v56 = vrot.slane %v980_v52, %v2840_v62  ;;  %v1304_v10 = vrot.slane %v977_v42, %v2848_v19  ;;  %1114 = vperm.xlu0 %1796, %v903_v3   ;;  %1162 = vperm.xlu1 %1797, %v919_v31   ;;  %v931_v12 = vsel %vm654_vm5, %v2717_v13, 362  ;;  %vm655_vm5 = vcmp.gt.f32.partialorder %v2536_v11, 0.0  ;;  %v3222_v31 = vld [vmem:[#allocation16_spill] sm:$0xff] }
 0x1e9   :  { %v932_v1 = vsel %vm655_vm5, %v2723_v35, 362  ;;  %v887_v61 = vsel %vm610_vm4, %v2725_v57, 362  ;;  %vm628_vm11 = vcmp.gt.f32.partialorder %v3219_v39, 0.0  ;;  %vm611_vm4 = vcmp.gt.f32.partialorder %v3222_v31, 0.0 }
 0x1ea   :  { %v1306_v16 = vsel %vm1305_vm14, %v1304_v10, %v1299_v32  ;;  %v905_v52 = vsel %vm628_vm11, %v3221_v14, 362  ;;  %v921_v32 = vsel %vm644_vm8, %v2668_v4, 362  ;;  %v888_v45 = vsel %vm611_vm4, %v2735_v7, 362 }
 0x1eb   :  { %v986_v8 = vpop.permute.xlu1 %985  ;;  %v1313_v51 = vsel %vm1312_vm15, %v1311_v56, %v1306_v16  ;;  %v983_v34 = vpop.permute.xlu0 %982  ;;  %v3223_v56 = vld [vmem:[#allocation40_spill] sm:$0xff] }
 0x1ec   :  { %v1318_v48 = vrot.slane %v983_v34, %v2860_v47  ;;  %1198 = vperm.xlu0 %1796, %v931_v12   ;;  %1063 = vperm.xlu1 %1797, %v886_v60   ;;  %v1324_v6 = vrot.slane %v986_v8, %v2747_v26  ;;  %vm656_vm5 = vcmp.gt.f32.partialorder %v3223_v56, 0.0  ;;  %v3224_v34 = vld [vmem:[#allocation15_spill] sm:$0xff]  ;;  %v3225_v12 = vld [vmem:[#allocation42_spill] sm:$0xff] }
 0x1ed   :  { %v933_v9 = vsel %vm656_vm5, %v2725_v57, 362  ;;  %vm612_vm11 = vcmp.gt.f32.partialorder %v3224_v34, 0.0  ;;  %vm657_vm8 = vcmp.gt.f32.partialorder %v3225_v12, 0.0  ;;  %vm3227_vm5 = vcmask 720512  }
 0x1ee   :  { %v2872_v21 = vsel %vm1319_vm7, %v1318_v48, %v1313_v51  ;;  %v934_v46 = vsel %vm657_vm8, %v2735_v7, 362  ;;  %v889_v57 = vsel %vm612_vm11, %v2737_v25, 362  ;;  %vm3228_vm11 = vcmask 786112  }
 0x1ef   :  { %v992_v33 = vpop.permute.xlu1 %991  ;;  %v989_v29 = vpop.permute.xlu0 %988  ;;  %vm3229_vm8 = vcmask 851712  }
 0x1f0   :  { %v1333_v13 = vrot.slane %v992_v33, %v2753_v20  ;;  %v1328_v36 = vrot.slane %v989_v29, %v2743_v24  ;;  %1117 = vperm.xlu0 %1796, %v904_v63   ;;  %1165 = vperm.xlu1 %1797, %v920_v55  }
 0x1f2   :  { %v1329_v38 = vsel %vm1221_vm2, %v1328_v36, %v1324_v6  ;;  %v3226_v6 = vld [vmem:[#allocation41_spill] sm:$0xff] }
 0x1f3   :  { %v998_v17 = vpop.permute.xlu1 %997  ;;  %v1334_v54 = vsel %vm1228_vm9, %v1333_v13, %v1329_v38  ;;  %v995_v40 = vpop.permute.xlu0 %994  ;;  %vm658_vm4 = vcmp.gt.f32.partialorder %v3226_v6, 0.0 }
 0x1f4   :  { %v1343_v18 = vrot.slane %v998_v17, %v2767_v41  ;;  %v1338_v28 = vrot.slane %v995_v40, %v2770_v5  ;;  %1201 = vperm.xlu0 %1796, %v932_v1   ;;  %1066 = vperm.xlu1 %1797, %v887_v61   ;;  %v935_v36 = vsel %vm658_vm4, %v2737_v25, 362  ;;  %vm3232_vm4 = vmmov %vm3228_vm11 }
 0x1f6   :  { %v1339_v11 = vsel %vm1235_vm12, %v1338_v28, %v1334_v54 }
 0x1f7   :  { %v1004_v43 = vpop.permute.xlu1 %1003  ;;  %v1344_v35 = vsel %vm1242_vm13, %v1343_v18, %v1339_v11  ;;  %v1001_v23 = vpop.permute.xlu0 %1000 }
 0x1f8   :  { %v1353_v42 = vrot.slane %v1004_v43, %v2780_v0  ;;  %v1348_v3 = vrot.slane %v1001_v23, %v2785_v15  ;;  %1120 = vperm.xlu0 %1796, %v905_v52   ;;  %1168 = vperm.xlu1 %1797, %v921_v32  }
 0x1fa   :  { %v1349_v10 = vsel %vm1249_vm1, %v1348_v3, %v1344_v35 }
 0x1fb   :  { %v1010_v16 = vpop.permute.xlu1 %1009  ;;  %v1354_v60 = vsel %vm1256_vm3, %v1353_v42, %v1349_v10  ;;  %v1007_v4 = vpop.permute.xlu0 %1006 }
 0x1fc   :  { %v1363_v8 = vrot.slane %v1010_v16, %v2792_v58  ;;  %v1358_v51 = vrot.slane %v1007_v4, %v2801_v44  ;;  %1204 = vperm.xlu0 %1796, %v933_v9   ;;  %1069 = vperm.xlu1 %1797, %v888_v45  }
 0x1fe   :  { %v1359_v48 = vsel %vm1263_vm6, %v1358_v51, %v1354_v60 }
 0x1ff   :  { %v1016_v22 = vpop.permute.xlu1 %1015  ;;  %v1364_v33 = vsel %vm1270_vm0, %v1363_v8, %v1359_v48  ;;  %v1013_v29 = vpop.permute.xlu0 %1012 }
 0x200   :  { %v1373_v63 = vrot.slane %v1016_v22, %v2808_v49  ;;  %v1368_v55 = vrot.slane %v1013_v29, %v2817_v59  ;;  %1207 = vperm.xlu0 %1796, %v934_v46   ;;  %1072 = vperm.xlu1 %1797, %v889_v57  }
 0x202   :  { %v1369_v13 = vsel %vm1277_vm10, %v1368_v55, %v1364_v33 }
 0x203   :  { %v1022_v50 = vpop.permute.xlu1 %1021  ;;  %v1374_v7 = vsel %vm3227_vm5, %v1373_v63, %v1369_v13  ;;  %v1019_v38 = vpop.permute.xlu0 %1018 }
 0x204   :  { %v1383_v1 = vrot.slane %v1022_v50, %v2828_v30  ;;  %v1378_v61 = vrot.slane %v1019_v38, %v2833_v53  ;;  %1210 = vperm.xlu0 %1796, %v935_v36  }
 0x206   :  { %v1379_v17 = vsel %vm3228_vm11, %v1378_v61, %v1374_v7  ;;  %vm1696_vm11 = vcmask 1041409  }
 0x207   :  { %v1028_v54 = vpop.permute.xlu1 %1027  ;;  %v1384_v40 = vsel %vm3229_vm8, %v1383_v1, %v1379_v17  ;;  %v1025_v18 = vpop.permute.xlu0 %1024 }
 0x208   :  { %v1393_v28 = vrot.slane %v1028_v54, %v2840_v62  ;;  %v1388_v39 = vrot.slane %v1025_v18, %v2848_v19 }
 0x20a   :  { %v1389_v25 = vsel %vm1305_vm14, %v1388_v39, %v1384_v40 }
 0x20b   :  { %v1034_v27 = vpop.permute.xlu1 %1033  ;;  %v1394_v11 = vsel %vm1312_vm15, %v1393_v28, %v1389_v25  ;;  %v1031_v43 = vpop.permute.xlu0 %1030 }
 0x20c   :  { %v1398_v35 = vrot.slane %v1031_v43, %v2860_v47  ;;  %v1403_v38 = vrot.slane %v1034_v27, %v2747_v26 }
 0x20e   :  { %v2925_v23 = vsel %vm1319_vm7, %v1398_v35, %v1394_v11 }
 0x20f   :  { %v1079_v14 = vpop.permute.xlu1 %1078  ;;  %v1076_v52 = vpop.permute.xlu0 %1075 }
 0x210   :  { %v1476_v32 = vrot.slane %v1079_v14, %v2743_v24  ;;  %v1472_v42 = vrot.slane %v1076_v52, %v2747_v26 }
 0x212   :  { %v1477_v3 = vsel %vm1221_vm2, %v1476_v32, %v1472_v42 }
 0x213   :  { %v1127_v31 = vpop.permute.xlu1 %1126  ;;  %v1124_v56 = vpop.permute.xlu0 %1123 }
 0x214   :  { %v1555_v10 = vrot.slane %v1127_v31, %v2743_v24  ;;  %v1551_v45 = vrot.slane %v1124_v56, %v2747_v26 }
 0x216   :  { %v1556_v9 = vsel %vm1221_vm2, %v1555_v10, %v1551_v45 }
 0x217   :  { %v1130_v16 = vpop.permute.xlu1 %1129  ;;  %v1082_v60 = vpop.permute.xlu0 %1081 }
 0x218   :  { %v1560_v4 = vrot.slane %v1130_v16, %v2753_v20  ;;  %v1481_v8 = vrot.slane %v1082_v60, %v2753_v20 }
 0x21a   :  { %v1561_v51 = vsel %vm1228_vm9, %v1560_v4, %v1556_v9  ;;  %v1482_v34 = vsel %vm1228_vm9, %v1481_v8, %v1477_v3 }
 0x21b   :  { %v1133_v12 = vpop.permute.xlu1 %1132  ;;  %v1085_v48 = vpop.permute.xlu0 %1084 }
 0x21c   :  { %v1565_v46 = vrot.slane %v1133_v12, %v2770_v5  ;;  %v1486_v57 = vrot.slane %v1085_v48, %v2770_v5 }
 0x21e   :  { %v1566_v22 = vsel %vm1235_vm12, %v1565_v46, %v1561_v51  ;;  %v1487_v33 = vsel %vm1235_vm12, %v1486_v57, %v1482_v34 }
 0x21f   :  { %v1136_v29 = vpop.permute.xlu1 %1135  ;;  %v1088_v63 = vpop.permute.xlu0 %1087 }
 0x220   :  { %v1570_v55 = vrot.slane %v1136_v29, %v2767_v41  ;;  %v1491_v6 = vrot.slane %v1088_v63, %v2767_v41 }
 0x222   :  { %v1571_v13 = vsel %vm1242_vm13, %v1570_v55, %v1566_v22  ;;  %v1492_v36 = vsel %vm1242_vm13, %v1491_v6, %v1487_v33 }
 0x223   :  { %v1091_v50 = vpop.permute.xlu1 %1090  ;;  %v1037_v7 = vpop.permute.xlu0 %1036 }
 0x224   :  { %v1496_v1 = vrot.slane %v1091_v50, %v2785_v15  ;;  %v1407_v61 = vrot.slane %v1037_v7, %v2743_v24 }
 0x226   :  { %v1497_v17 = vsel %vm1249_vm1, %v1496_v1, %v1492_v36  ;;  %v1408_v54 = vsel %vm1221_vm2, %v1407_v61, %v1403_v38 }
 0x227   :  { %v1172_v40 = vpop.permute.xlu1 %1171  ;;  %v1139_v18 = vpop.permute.xlu0 %1138 }
 0x228   :  { %v1575_v28 = vrot.slane %v1139_v18, %v2785_v15  ;;  %v1630_v43 = vrot.slane %v1172_v40, %v2747_v26 }
 0x22a   :  { %v1576_v39 = vsel %vm1249_vm1, %v1575_v28, %v1571_v13 }
 0x22b   :  { %v1040_v25 = vpop.permute.xlu1 %1039  ;;  %v1175_v11 = vpop.permute.xlu0 %1174 }
 0x22c   :  { %v1412_v27 = vrot.slane %v1040_v25, %v2753_v20  ;;  %v1634_v35 = vrot.slane %v1175_v11, %v2743_v24 }
 0x22e   :  { %v1413_v14 = vsel %vm1228_vm9, %v1412_v27, %v1408_v54  ;;  %v1635_v52 = vsel %vm1221_vm2, %v1634_v35, %v1630_v43  ;;  %vm3230_vm2 = vmmov %vm3227_vm5 }
 0x22f   :  { %v1142_v32 = vpop.permute.xlu1 %1141  ;;  %v1094_v42 = vpop.permute.xlu0 %1093  ;;  %vm3233_vm5 = vmmov %vm3232_vm4 }
 0x230   :  { %v1580_v3 = vrot.slane %v1142_v32, %v2780_v0  ;;  %v1501_v31 = vrot.slane %v1094_v42, %v2780_v0 }
 0x232   :  { %v1581_v56 = vsel %vm1256_vm3, %v1580_v3, %v1576_v39  ;;  %v1502_v10 = vsel %vm1256_vm3, %v1501_v31, %v1497_v17 }
 0x233   :  { %v1043_v45 = vpop.permute.xlu1 %1042  ;;  %v1178_v26 = vpop.permute.xlu0 %1177 }
 0x234   :  { %v1417_v9 = vrot.slane %v1043_v45, %v2770_v5  ;;  %v1639_v24 = vrot.slane %v1178_v26, %v2753_v20 }
 0x236   :  { %v2964_v16 = vsel %vm1235_vm12, %v1417_v9, %v1413_v14  ;;  %v2967_v60 = vsel %vm1228_vm9, %v1639_v24, %v1635_v52  ;;  %vm3231_vm9 = vmmov %vm3230_vm2 }
 0x237   :  { %v1145_v4 = vpop.permute.xlu1 %1144  ;;  %v1097_v8 = vpop.permute.xlu0 %1096 }
 0x238   :  { %v1506_v51 = vrot.slane %v1097_v8, %v2801_v44  ;;  %v1585_v43 = vrot.slane %v1145_v4, %v2801_v44 }
 0x23a   :  { %v1507_v34 = vsel %vm1263_vm6, %v1506_v51, %v1502_v10  ;;  %v1586_v3 = vsel %vm1263_vm6, %v1585_v43, %v1581_v56 }
 0x23b   :  { %v1046_v12 = vpop.permute.xlu1 %1045  ;;  %v2971_v48 = vpop.permute.xlu0 %1180 }
 0x23c   :  { %v1422_v45 = vrot.slane %v1046_v12, %v2767_v41  ;;  %v1644_v26 = vrot.slane %v2971_v48, %v2770_v5 }
 0x23f   :  { %v1148_v46 = vpop.permute.xlu1 %1147  ;;  %v1100_v57 = vpop.permute.xlu0 %1099 }
 0x240   :  { %v1590_v27 = vrot.slane %v1148_v46, %v2792_v58  ;;  %v1511_v35 = vrot.slane %v1100_v57, %v2792_v58 }
 0x242   :  { %v1591_v4 = vsel %vm1270_vm0, %v1590_v27, %v1586_v3  ;;  %v1512_v8 = vsel %vm1270_vm0, %v1511_v35, %v1507_v34 }
 0x243   :  { %v2973_v22 = vpop.permute.xlu1 %1048  ;;  %v2975_v20 = vpop.permute.xlu0 %1183 }
 0x247   :  { %v1151_v33 = vpop.permute.xlu1 %1150  ;;  %v1103_v29 = vpop.permute.xlu0 %1102 }
 0x248   :  { %v1595_v32 = vrot.slane %v1151_v33, %v2817_v59  ;;  %v1516_v42 = vrot.slane %v1103_v29, %v2817_v59 }
 0x24a   :  { %v1596_v12 = vsel %vm1277_vm10, %v1595_v32, %v1591_v4  ;;  %v1517_v5 = vsel %vm1277_vm10, %v1516_v42, %v1512_v8 }
 0x24b   :  { %v2977_v63 = vpop.permute.xlu1 %1051  ;;  %v2979_v55 = vpop.permute.xlu0 %1186 }
 0x24f   :  { %v1154_v6 = vpop.permute.xlu1 %1153  ;;  %v1106_v13 = vpop.permute.xlu0 %1105 }
 0x250   :  { %v1600_v31 = vrot.slane %v1154_v6, %v2808_v49  ;;  %v1521_v10 = vrot.slane %v1106_v13, %v2808_v49 }
 0x252   :  { %v1601_v29 = vsel %vm3230_vm2, %v1600_v31, %v1596_v12  ;;  %v1522_v34 = vsel %vm3231_vm9, %v1521_v10, %v1517_v5  ;;  %vm3234_vm2 = vmmov %vm3229_vm8  ;;  %vm1700_vm9 = vcmask 1041408   ;;  %v1654_v31 = vrot.slane %v2979_v55, %v2785_v15 }
 0x253   :  { %v2981_v36 = vpop.permute.xlu1 %1054  ;;  %v2983_v50 = vpop.permute.xlu0 %1189 }
 0x257   :  { %v1157_v7 = vpop.permute.xlu1 %1156  ;;  %v1109_v38 = vpop.permute.xlu0 %1108 }
 0x258   :  { %v1605_v9 = vrot.slane %v1157_v7, %v2833_v53  ;;  %v1526_v24 = vrot.slane %v1109_v38, %v2833_v53  ;;  %v1427_v7 = vrot.slane %v2973_v22, %v2785_v15  ;;  %v1437_v15 = vrot.slane %v2981_v36, %v2801_v44 }
 0x25a   :  { %v1606_v38 = vsel %vm3232_vm4, %v1605_v9, %v1601_v29 }
 0x25b   :  { %v2985_v1 = vpop.permute.xlu1 %1057  ;;  %v2987_v61 = vpop.permute.xlu0 %1192 }
 0x25c   :  { %v1664_v55 = vrot.slane %v2987_v61, %v2801_v44 }
 0x25f   :  { %v1160_v17 = vpop.permute.xlu1 %1159  ;;  %v1112_v54 = vpop.permute.xlu0 %1111 }
 0x260   :  { %v1610_v51 = vrot.slane %v1160_v17, %v2828_v30  ;;  %v1531_v56 = vrot.slane %v1112_v54, %v2828_v30  ;;  %v1527_v17 = vsel %vm3233_vm5, %v1526_v24, %v1522_v34  ;;  %v1423_v54 = vsel %vm1242_vm13, %v1422_v45, %v2964_v16 }
 0x261   :  { %v1649_v16 = vrot.slane %v2975_v20, %v2767_v41  ;;  %v1428_v3 = vsel %vm1249_vm1, %v1427_v7, %v1423_v54  ;;  %vm1761_vm5 = vsmask.f32 256 }
 0x263   :  { %v2989_v40 = vpop.permute.xlu1 %1060  ;;  %v2991_v18 = vpop.permute.xlu0 %1195 }
 0x264   :  { %v1447_v36 = vrot.slane %v2989_v40, %v2817_v59 }
 0x267   :  { %v1163_v28 = vpop.permute.xlu1 %1162  ;;  %v1115_v39 = vpop.permute.xlu0 %1114 }
 0x268   :  { %v1615_v48 = vrot.slane %v1163_v28, %v2848_v19  ;;  %v1536_v33 = vrot.slane %v1115_v39, %v2848_v19  ;;  %v1611_v28 = vsel %vm3229_vm8, %v1610_v51, %v1606_v38  ;;  %v1532_v39 = vsel %vm3234_vm2, %v1531_v56, %v1527_v17 }
 0x269   :  { %vm1723_vm8 = vcmask 1024  }
 0x26a   :  { %v1537_v35 = vsel %vm1305_vm14, %v1536_v33, %v1532_v39 }
 0x26b   :  { %v2993_v25 = vpop.permute.xlu1 %1063  ;;  %v2995_v11 = vpop.permute.xlu0 %1198 }
 0x26c   :  { %v1674_v44 = vrot.slane %v2995_v11, %v2817_v59 }
 0x26f   :  { %v1166_v14 = vpop.permute.xlu1 %1165  ;;  %v1118_v52 = vpop.permute.xlu0 %1117 }
 0x270   :  { %v1620_v6 = vrot.slane %v1166_v14, %v2840_v62  ;;  %v1541_v13 = vrot.slane %v1118_v52, %v2840_v62  ;;  %v1616_v62 = vsel %vm1305_vm14, %v1615_v48, %v1611_v28  ;;  %v1645_v52 = vsel %vm1235_vm12, %v1644_v26, %v2967_v60 }
 0x271   :  { %v1659_v60 = vrot.slane %v2983_v50, %v2780_v0 }
 0x272   :  { %v1621_v32 = vsel %vm1312_vm15, %v1620_v6, %v1616_v62  ;;  %v1542_v42 = vsel %vm1312_vm15, %v1541_v13, %v1537_v35 }
 0x273   :  { %v3014_v46 = vpop.permute.xlu1 %1066  ;;  %v3016_v57 = vpop.permute.xlu0 %1201 }
 0x274   :  { %v1457_v59 = vrot.slane %v3014_v46, %v2833_v53 }
 0x277   :  { %v1169_v43 = vpop.permute.xlu1 %1168  ;;  %v1121_v27 = vpop.permute.xlu0 %1120 }
 0x278   :  { %v1625_v22 = vrot.slane %v1169_v43, %v2860_v47  ;;  %v1546_v14 = vrot.slane %v1121_v27, %v2860_v47  ;;  %v1432_v47 = vrot.slane %v2977_v63, %v2780_v0  ;;  %v1650_v0 = vsel %vm1242_vm13, %v1649_v16, %v1645_v52 }
 0x279   :  { %v1655_v50 = vsel %vm1249_vm1, %v1654_v31, %v1650_v0  ;;  %vm3235_vm13 = vcmask 720512  }
 0x27a   :  { %v1626_v10 = vsel %vm1319_vm7, %v1625_v22, %v1621_v32  ;;  %v1547_v45 = vsel %vm1319_vm7, %v1546_v14, %v1542_v42  ;;  %v1433_v4 = vsel %vm1256_vm3, %v1432_v47, %v1428_v3  ;;  %v1660_v8 = vsel %vm1256_vm3, %v1659_v60, %v1655_v50  ;;  %vm3236_vm1 = vmmov %vm3235_vm13 }
 0x27b   :  { %v1698_v41 = vsel %vm1696_vm11, %v1626_v10, %v2925_v23  ;;  %v1697_v20 = vsel %vm1696_vm11, %v1547_v45, %v2872_v21  ;;  %v1070_v26 = vpop.permute.xlu1 %1069  ;;  %v1205_v9 = vpop.permute.xlu0 %1204  ;;  %v1442_v23 = vrot.slane %v2985_v1, %v2792_v58  ;;  %v1669_v21 = vrot.slane %v2991_v18, %v2792_v58  ;;  %vm3237_vm3 = vmmov %vm3232_vm4  ;;  %v3243_v45 = vld [vmem:[#allocation14_spill] sm:$0xff] }
 0x27c   :  { %v1702_v24 = vsel %vm1700_vm9, %v1698_v41, 2147483647  ;;  %v1701_v63 = vsel %vm1700_vm9, %v1697_v20, 2147483647  ;;  %v1452_v1 = vrot.slane %v2993_v25, %v2808_v49  ;;  %v1679_v58 = vrot.slane %v3016_v57, %v2808_v49  ;;  %v3246_v41 = vld [vmem:[#allocation23_spill] sm:$0xff] }
 0x27d   :  { %vm1705_vm12 = vcmp.lt.s32.totalorder %v1701_v63, %v1702_v24  ;;  %v1438_v56 = vsel %vm1263_vm6, %v1437_v15, %v1433_v4  ;;  %v1665_v40 = vsel %vm1263_vm6, %v1664_v55, %v1660_v8  ;;  %v1684_v11 = vrot.slane %v1205_v9, %v2833_v53  ;;  %vm3238_vm6 = vmmov %vm3237_vm3 }
 0x27e   :  { %v1706_v61 = vsel %vm1705_vm12, %v1701_v63, %v1702_v24  ;;  %v1443_v12 = vsel %vm1270_vm0, %v1442_v23, %v1438_v56  ;;  %v1670_v5 = vsel %vm1270_vm0, %v1669_v21, %v1665_v40  ;;  %v1462_v25 = vrot.slane %v1070_v26, %v2828_v30  ;;  %vm3239_vm0 = vmmov %vm3234_vm2 }
 0x27f   :  { %v1073_v18 = vpop.permute.xlu1 %1072  ;;  %v1208_v51 = vpop.permute.xlu0 %1207  ;;  %v1448_v49 = vsel %vm1277_vm10, %v1447_v36, %v1443_v12  ;;  %v1675_v57 = vsel %vm1277_vm10, %v1674_v44, %v1670_v5  ;;  %vm3240_vm15 = vmmov %vm3239_vm0  ;;  %vm1703_vm7 = vcmask 861184   ;;  %v1824_v42 = vmov 1966171168  }
 0x280   :  { %v1689_v48 = vrot.slane %v1208_v51, %v2828_v30  ;;  %v1467_v33 = vrot.slane %v1073_v18, %v2848_v19  ;;  %v1453_v29 = vsel %vm3235_vm13, %v1452_v1, %v1448_v49  ;;  %v1680_v46 = vsel %vm3236_vm1, %v1679_v58, %v1675_v57 }
 0x281   :  { %v1458_v53 = vsel %vm3237_vm3, %v1457_v59, %v1453_v29  ;;  %v1685_v6 = vsel %vm3238_vm6, %v1684_v11, %v1680_v46  ;;  %v1739_v3 = vunpack.c.l.s4 %v1824_v42  ;;  %vm1764_vm2 = vsmask.f32 1280 }
 0x282   :  { %v1463_v7 = vsel %vm3239_vm0, %v1462_v25, %v1458_v53  ;;  %v1690_v30 = vsel %vm3240_vm15, %v1689_v48, %v1685_v6  ;;  %vm3111_vm1 = vmand %vm1696_vm11, %vm1764_vm2  ;;  %v3247_v20 = vmov 0  }
 0x283   :  { %v1211_v34 = vpop.permute.xlu0 %1210  ;;  %v1468_v38 = vsel %vm1305_vm14, %v1467_v33, %v1463_v7  ;;  %v1740_v47 = vunpack.c.0.s8 %v1739_v3 }
 0x284   :  { %v1694_v13 = vrot.slane %v1211_v34, %v2848_v19 }
 0x285   :  { %v1743_v9 = vsub.s32 %v1740_v47, %v2730_v2  ;;  %v1771_v2 = vld [vmem:[#allocation2] sm:$0x7] }
 0x286   :  { %v1695_v17 = vsel %vm1305_vm14, %v1694_v13, %v1690_v30  ;;  %vm1760_vm14 = vcmask 1040384  }
 0x287   :  { %v1699_v54 = vsel %vm1696_vm11, %v1695_v17, %v1468_v38  ;;  %vm3101_vm9 = vmand %vm1760_vm14, %vm1761_vm5  ;;  %vm1768_vm14 = vsmask.f32 2304 }
 0x288   :  { %v1704_v28 = vsel %vm1703_vm7, %v1699_v54, 2147483647  ;;  %vm1766_vm11 = vmor %vm3111_vm1, %vm3101_vm9 }
 0x289   :  { %vm1707_vm10 = vcmp.lt.s32.totalorder %v1706_v61, %v1704_v28 }
 0x28a   :  { %v1708_v39 = vsel %vm1707_vm10, %v1706_v61, %v1704_v28 }
 0x28b   :  { %v1710_v43 = vshra.s32 %v1708_v39, 16  ;;  %v1709_v62 = vand.u32 65535, %v1708_v39 }
 0x28d   :  { %v1712_v27 = vcvt.s32.f32 %v1710_v43  ;;  %v1711_v19 = vcvt.s32.f32 %v1709_v62 }
 0x28f   :  { %1713 = vmin.xlane.f32.xlu1 %v1712_v27 }
 0x31c   :  { %v1714_v35 = vpop.xlane.xlu1 %1713 }
 0x31d   :  { %vm1715_vm4 = vcmp.eq.f32.partialorder %v1712_v27, %v1714_v35  ;;  %v1720_v14 = vcvt.f32.s32 %v1714_v35 }
 0x31e   :  { %v1716_v22 = vsel %vm1715_vm4, %v1711_v19, inf  ;;  %vm1767_vm4 = vcmask 862210  }
 0x31f   :  { %1717 = vmin.xlane.f32.xlu0 %v1716_v22  ;;  %v1721_v52 = vshll.u32 %v1720_v14, 16 }
 0x3ac   :  { %v1718_v16 = vpop.xlane.xlu0 %1717 }
 0x3ad   :  { %v1719_v32 = vcvt.f32.s32 %v1718_v16 }
 0x3af   :  { %v1722_v31 = vadd.s32 %v1721_v52, %v1719_v32 }
 0x3b1   :  { %1724 = vst.msk [vmem:[%s3137_s1] sm:$0x3] %vm1723_vm8, %v1722_v31  ;;  %vm1725_vm12 = vcmp.lt.s32.totalorder %v3196_v37, %v1722_v31  ;;  %vm1726_vm13 = vcmp.lt.s32.totalorder %v3243_v45, %v1722_v31  ;;  %vm1727_vm6 = vcmp.lt.s32.totalorder %v3246_v41, %v1722_v31  ;;  %vm1769_vm8 = vmand %vm1767_vm4, %vm1768_vm14  ;;  %s1825_s1 = smov [#allocation2]  }
 0x3b2   :  { %vm1728_vm3 = vmpackc.low %vm1725_vm12, %vm1725_vm12  ;;  %s1782_s26 = sshll.u32 %s1825_s1, 4  ;;  %s1783_s26 = int_to_ptr.vmem [resolvable:$true] %s1782_s26 }
 0x3b3   :  { %vm1729_vm0 = vmpackc.even %vm1728_vm3, %vm1728_vm3  ;;  %s1798_s27 = scalar_lea.vmem %s1783_s26, 48  ;;  %s1802_s28 = scalar_lea.vmem %s1783_s26, 64 }
 0x3b4   :  { %vm1730_vm15 = vmpackc.low %vm1726_vm13, %vm1726_vm13  ;;  %v1734_v26 = vsel %vm1729_vm0, 16843009, %v3247_v20  ;;  %p1799_p0 = scmp.ne.s32.totalorder %s1783_s26, %s1798_s27  ;;  %p1803_p1 = scmp.lt.s32.totalorder %s1783_s26, %s1783_s26 }
 0x3b5   :  { %vm1731_vm7 = vmpackc.even %vm1730_vm15, %vm1730_vm15  ;;  %p1804_p2 = scmp.lt.s32.totalorder %s1802_s28, %s1798_s27 }
 0x3b6   :  { %vm1732_vm10 = vmpackc.low %vm1727_vm6, %vm1727_vm6  ;;  %v1735_v37 = vsel %vm1731_vm7, 16843009, %v3247_v20 }
 0x3b7   :  { %vm1733_vm5 = vmpackc.even %vm1732_vm10, %vm1732_vm10  ;;  %v1737_v15 = vcombine.low %v1734_v26, %v1735_v37  ;;  %p1805_p3 = por %p1804_p2, %p1803_p1 }
 0x3b8   :  { %v1736_v55 = vsel %vm1733_vm5, 16843009, %v3247_v20  ;;  %vm1770_vm2 = vmor %vm1769_vm8, %vm1766_vm11 }
 0x3b9   :  { %v1744_v24 = vrot.slane %v1737_v15, %v1743_v9  ;;  %v1751_v63 = vrot.slane %v1736_v55, %v1743_v9  ;;  %p1806_p4 = pnand %p1805_p3, %p1799_p0 }
 0x3bb   :  { %v1752_v0 = vcombine.low %v1744_v24, %v1751_v63 }
 0x3bd   :  { %v1759_v23 = vrot.slane %v1752_v0, %v1743_v9 }
 0x3bf   :  { %v1772_v21 = vsel %vm1770_vm2, %v1759_v23, %v1771_v2 }
 0x3c0   :  { %1773 = vst [vmem:[#allocation2] sm:$0x7] %v1772_v21 }
 0x3c1   :  { %1809 = shalt.err (!%p1806_p4)
}
 0x3c2   :  { %s1810_s3 = scalar_lea.hbm %s3138_s2, 48 }
 0x3c3   :  { %p1811_p5 = scmp.ne.s32.totalorder %s3138_s2, %s1810_s3  ;;  %p1814_p6 = scmp.lt.u32.totalorder %s1810_s3, %s3138_s2 }
 0x3c5   :  { %p1816_p7 = pnand %p1814_p6, %p1811_p5 }
 0x3c7   :  { %1819 = shalt.err (!%p1816_p7)
}
 0x3c8   :  { %1785 = dma.vmem_to_hbm [thread:$0]  %s1783_s26, 48, %s3138_s2, [#allocation3]  }
 0x3c9   :  { %1820 = dma.done.wait [#allocation3], 48  }
 0x3ca   :  { %1821 = vsyncadd [#allocation3], 4294967248 }
 0x3cb   :  { %1791 = vsyncpa [#allocation3], 1 }

</bundles_post_ra>
